<compile_context>
chip_gen: v6e
topology: v6e:2x2x1
jax: 0.10.0
libtpu: 0.0.40
codegen_flags: <defaults>
</compile_context>

<pallas_src>
import functools

import jax
import jax.numpy as jnp
from jax.experimental import pallas as pl
from jax.experimental.pallas import tpu as pltpu


LAYER_PARAM_ORDER = [
    "ln1_w", "ln1_b",
    "w_qkv", "b_qkv", "wo", "bo",
    "ln2_w", "ln2_b",
    "w1", "b1", "w2", "b2",
]


def _layernorm(x, w, b, eps=1e-5):
    mu = jnp.mean(x, axis=-1, keepdims=True)
    var = jnp.mean((x - mu) ** 2, axis=-1, keepdims=True)
    return (x - mu) * jax.lax.rsqrt(var + eps) * w + b


def encoder_kernel(x_ref, mask_ref,
                   ln1_w_ref, ln1_b_ref,
                   wqkv_ref, bqkv_ref, wo_ref, bo_ref,
                   ln2_w_ref, ln2_b_ref,
                   w1_ref, b1_ref, w2_ref, b2_ref,
                   lnf_w_ref, lnf_b_ref,
                   out_ref, x_acc,
                   *, heads: int):
    """One (batch element, layer) grid step of the pre-LN encoder stack."""
    f32 = jnp.float32
    l = pl.program_id(1)
    n_layers = pl.num_programs(1)

    # Load the residual stream into the VMEM accumulator at the first layer.
    @pl.when(l == 0)
    def _():
        x_acc[...] = x_ref[0]

    x = x_acc[...]                                  # (S, D) f32
    S, D = x.shape
    dk = D // heads
    scale = 1.0 / float(dk) ** 0.5

    # Additive attention bias, computed once per step (mask stored as int8 0/1).
    mbias = jnp.where(mask_ref[0].astype(f32) != 0.0, 0.0, -1e30)   # (S, S) f32

    # ---------------- self-attention block (pre-LN, residual add) ----------------
    z = _layernorm(x, ln1_w_ref[0, 0], ln1_b_ref[0, 0])             # (S, D)

    # Fused QKV projection: one lane-dense (S,D)@(D,3D) MXU matmul.
    qkv = jnp.dot(z, wqkv_ref[0], preferred_element_type=f32) + bqkv_ref[0, 0]
    q = qkv[:, 0:D] * scale                          # fold 1/sqrt(dk) into q
    k = qkv[:, D:2 * D]
    v = qkv[:, 2 * D:3 * D]

    def split_heads(t):                              # (S, D) -> (H, S, dk)
        return jnp.stack([t[:, h * dk:(h + 1) * dk] for h in range(heads)], axis=0)

    qh, kh, vh = split_heads(q), split_heads(k), split_heads(v)

    # Scores / weights / values for all heads as batched contractions.
    s = jnp.einsum("hqd,hkd->hqk", qh, kh, preferred_element_type=f32)  # (H, S, S)
    s = s + mbias[None, :, :]
    s = s - jnp.max(s, axis=-1, keepdims=True)
    p = jnp.exp(s)
    p = p * pl.reciprocal(jnp.sum(p, axis=-1, keepdims=True), approx=True)

    o = jnp.einsum("hqk,hkd->hqd", p, vh, preferred_element_type=f32)   # (H, S, dk)

    # Head-concat then a single lane-dense (S,D)@(D,D) output projection.
    o_cat = jnp.concatenate([o[h] for h in range(heads)], axis=-1)      # (S, D)
    attn = jnp.dot(o_cat, wo_ref[0], preferred_element_type=f32) + bo_ref[0, 0]
    x = x + attn

    # ---------------- feed-forward block (pre-LN, residual add) ----------------
    z = _layernorm(x, ln2_w_ref[0, 0], ln2_b_ref[0, 0])
    h1 = jnp.dot(z, w1_ref[0], preferred_element_type=f32) + b1_ref[0, 0]
    h1 = jnp.maximum(h1, 0.0)                                            # ReLU
    ff = jnp.dot(h1, w2_ref[0], preferred_element_type=f32) + b2_ref[0, 0]
    x = x + ff

    x_acc[...] = x

    # Final nn.LayerNorm of the Encoder, fused into the last layer step.
    @pl.when(l == n_layers - 1)
    def _():
        out_ref[0] = _layernorm(x, lnf_w_ref[0], lnf_b_ref[0])


@functools.partial(jax.jit, static_argnames=("heads",))
def encoder_forward(x, mask, params, *, heads):
    """Full Encoder: n_layers pre-LN attention layers + fused final LayerNorm."""
    B, S, D = x.shape
    L = params["w_qkv"].shape[0]
    F = params["w1"].shape[-1]
    mask_i8 = (mask != 0).astype(jnp.int8)          # compact mask (4x fewer bytes)

    x_spec = pl.BlockSpec((1, S, D), lambda b, l: (b, 0, 0))
    mask_spec = pl.BlockSpec((1, S, S), lambda b, l: (b, 0, 0))
    out_spec = pl.BlockSpec((1, S, D), lambda b, l: (b, 0, 0))

    def layer_spec(arr):                             # (L, ...) — indexed by layer
        n = len(arr.shape)
        block = (1,) + arr.shape[1:]
        return pl.BlockSpec(block, lambda b, l, _n=n: (l,) + (0,) * (_n - 1))

    def const_spec(arr):                             # replicated across the grid
        n = len(arr.shape)
        return pl.BlockSpec(arr.shape, lambda b, l, _n=n: (0,) * _n)

    plist = [params[name] for name in LAYER_PARAM_ORDER]

    flops = B * L * (8 * S * D * D + 4 * S * S * D + 4 * S * D * F)
    transcendentals = B * L * heads * S * S
    bytes_accessed = (2 * B * S * D * 4 + B * S * S
                      + L * (4 * D * D + 2 * D * F + 10 * D + F) * 4)

    return pl.pallas_call(
        functools.partial(encoder_kernel, heads=heads),
        out_shape=jax.ShapeDtypeStruct((B, S, D), jnp.float32),
        grid=(B, L),
        in_specs=([x_spec, mask_spec]
                  + [layer_spec(p) for p in plist]
                  + [const_spec(params["ln_f_w"]), const_spec(params["ln_f_b"])]),
        out_specs=out_spec,
        scratch_shapes=[pltpu.VMEM((S, D), jnp.float32)],   # resident residual
        compiler_params=pltpu.CompilerParams(
            dimension_semantics=("parallel", "arbitrary")),
        cost_estimate=pl.CostEstimate(
            flops=flops,
            transcendentals=transcendentals,
            bytes_accessed=bytes_accessed),
    )(x, mask_i8, *plist, params["ln_f_w"], params["ln_f_b"])


# ---------------- parameter construction (stacked-layer layout) ----------------

def init_params(key, d_model, d_ff, heads, n_layers):
    D, F, L = d_model, d_ff, n_layers
    ks = jax.random.split(key, 8)
    wq = 0.02 * jax.random.normal(ks[0], (L, D, D), jnp.float32)
    wk = 0.02 * jax.random.normal(ks[1], (L, D, D), jnp.float32)
    wv = 0.02 * jax.random.normal(ks[2], (L, D, D), jnp.float32)
    w_qkv = jnp.concatenate([wq, wk, wv], axis=-1)               # (L, D, 3D)
    b_qkv = 0.02 * jax.random.normal(ks[3], (L, 1, 3 * D), jnp.float32)
    wo = 0.02 * jax.random.normal(ks[4], (L, D, D), jnp.float32)
    bo = 0.02 * jax.random.normal(ks[5], (L, 1, D), jnp.float32)
    w1 = 0.02 * jax.random.normal(ks[6], (L, D, F), jnp.float32)
    w2 = 0.02 * jax.random.normal(ks[7], (L, F, D), jnp.float32)
    params = {
        "ln1_w": jnp.ones((L, 1, D), jnp.float32),
        "ln1_b": jnp.zeros((L, 1, D), jnp.float32),
        "w_qkv": w_qkv,
        "b_qkv": b_qkv,
        "wo": wo,
        "bo": bo,
        "ln2_w": jnp.ones((L, 1, D), jnp.float32),
        "ln2_b": jnp.zeros((L, 1, D), jnp.float32),
        "w1": w1,
        "b1": jnp.zeros((L, 1, F), jnp.float32),
        "w2": w2,
        "b2": jnp.zeros((L, 1, D), jnp.float32),
        "ln_f_w": jnp.ones((1, D), jnp.float32),
        "ln_f_b": jnp.zeros((1, D), jnp.float32),
    }
    return params


# ---------------- pure-JAX reference (same precision policy, exact divide) ----------------

def encoder_reference(x, mask, params, heads):
    B, S, D = x.shape
    L = params["w_qkv"].shape[0]
    dk = D // heads
    scale = 1.0 / float(dk) ** 0.5
    mbias = jnp.where(mask != 0, 0.0, -1e30).astype(jnp.float32)     # (B, S, S)

    def split(t):                                    # (B, S, D) -> (B, H, S, dk)
        return t.reshape(B, S, heads, dk).transpose(0, 2, 1, 3)

    for l in range(L):
        z = _layernorm(x, params["ln1_w"][l, 0], params["ln1_b"][l, 0])
        qkv = z @ params["w_qkv"][l] + params["b_qkv"][l, 0]
        q = qkv[..., :D] * scale
        k = qkv[..., D:2 * D]
        v = qkv[..., 2 * D:]
        s = jnp.einsum("bhqd,bhkd->bhqk", split(q), split(k)) + mbias[:, None]
        s = s - jnp.max(s, axis=-1, keepdims=True)
        p = jnp.exp(s)
        p = p / jnp.sum(p, axis=-1, keepdims=True)
        o = jnp.einsum("bhqk,bhkd->bhqd", p, split(v))
        o = o.transpose(0, 2, 1, 3).reshape(B, S, D)
        x = x + o @ params["wo"][l] + params["bo"][l, 0]
        z = _layernorm(x, params["ln2_w"][l, 0], params["ln2_b"][l, 0])
        h1 = jnp.maximum(z @ params["w1"][l] + params["b1"][l, 0], 0.0)
        x = x + h1 @ params["w2"][l] + params["b2"][l, 0]
    return _layernorm(x, params["ln_f_w"][0], params["ln_f_b"][0])


if __name__ == "__main__":
    # Small shapes: batch=2, seq=8, d_model=32, d_ff=64, heads=4, n_layers=2
    B, S, D, F, H, L = 2, 8, 32, 64, 4, 2

    key = jax.random.PRNGKey(0)
    key, kx = jax.random.split(key)
    x = jax.random.normal(kx, (B, S, D), jnp.float32)
    # Causal mask (exercises the masking path; no fully-masked rows).
    mask = jnp.broadcast_to(jnp.tril(jnp.ones((S, S), jnp.float32)), (B, S, S))

    params = init_params(key, d_model=D, d_ff=F, heads=H, n_layers=L)

    out = jax.block_until_ready(encoder_forward(x, mask, params, heads=H))
    ref = jax.block_until_ready(encoder_reference(x, mask, params, H))

    assert out.shape == (B, S, D), out.shape
    assert bool(jnp.all(jnp.isfinite(out)))
    max_err = float(jnp.max(jnp.abs(out - ref)))
    assert max_err < 2e-2, f"mismatch vs reference: {max_err}"
    print("KERNEL_OK")
</pallas_src>

<mosaic_0001>
module attributes {stable_mosaic.version = 11 : i64} {
  func.func @encoder_kernel(%arg0: i32, %arg1: i32, %arg2: memref<1x8x32xf32, #tpu.memory_space<vmem>>, %arg3: memref<1x8x8xi8, #tpu.memory_space<vmem>>, %arg4: memref<1x1x32xf32, #tpu.memory_space<vmem>>, %arg5: memref<1x1x32xf32, #tpu.memory_space<vmem>>, %arg6: memref<1x32x96xf32, #tpu.memory_space<vmem>>, %arg7: memref<1x1x96xf32, #tpu.memory_space<vmem>>, %arg8: memref<1x32x32xf32, #tpu.memory_space<vmem>>, %arg9: memref<1x1x32xf32, #tpu.memory_space<vmem>>, %arg10: memref<1x1x32xf32, #tpu.memory_space<vmem>>, %arg11: memref<1x1x32xf32, #tpu.memory_space<vmem>>, %arg12: memref<1x32x64xf32, #tpu.memory_space<vmem>>, %arg13: memref<1x1x64xf32, #tpu.memory_space<vmem>>, %arg14: memref<1x64x32xf32, #tpu.memory_space<vmem>>, %arg15: memref<1x1x32xf32, #tpu.memory_space<vmem>>, %arg16: memref<1x32xf32, #tpu.memory_space<vmem>>, %arg17: memref<1x32xf32, #tpu.memory_space<vmem>>, %arg18: memref<1x8x32xf32, #tpu.memory_space<vmem>>, %arg19: memref<8x32xf32, #tpu.memory_space<vmem>>) attributes {dimension_semantics = [#tpu.dimension_semantics<parallel>, #tpu.dimension_semantics<arbitrary>], iteration_bounds = array<i64: 2, 2>, scalar_prefetch = 0 : i64, scratch_operands = 1 : i64, tpu.core_type = #tpu.core_type<tc>, window_params = [{transform_indices = @transform_0, window_bounds = array<i64: 1, 8, 32>}, {transform_indices = @transform_1, window_bounds = array<i64: 1, 8, 8>}, {transform_indices = @transform_2, window_bounds = array<i64: 1, 1, 32>}, {transform_indices = @transform_3, window_bounds = array<i64: 1, 1, 32>}, {transform_indices = @transform_4, window_bounds = array<i64: 1, 32, 96>}, {transform_indices = @transform_5, window_bounds = array<i64: 1, 1, 96>}, {transform_indices = @transform_6, window_bounds = array<i64: 1, 32, 32>}, {transform_indices = @transform_7, window_bounds = array<i64: 1, 1, 32>}, {transform_indices = @transform_8, window_bounds = array<i64: 1, 1, 32>}, {transform_indices = @transform_9, window_bounds = array<i64: 1, 1, 32>}, {transform_indices = @transform_10, window_bounds = array<i64: 1, 32, 64>}, {transform_indices = @transform_11, window_bounds = array<i64: 1, 1, 64>}, {transform_indices = @transform_12, window_bounds = array<i64: 1, 64, 32>}, {transform_indices = @transform_13, window_bounds = array<i64: 1, 1, 32>}, {pipeline_mode = #tpu.pipeline_mode<synchronous>, transform_indices = @transform_14, window_bounds = array<i64: 1, 32>}, {pipeline_mode = #tpu.pipeline_mode<synchronous>, transform_indices = @transform_15, window_bounds = array<i64: 1, 32>}, {transform_indices = @transform_16, window_bounds = array<i64: 1, 8, 32>}]} {
    %c0_i32 = arith.constant 0 : i32
    %0 = arith.cmpi eq, %arg1, %c0_i32 : i32
    %1 = arith.extui %0 : i1 to i32
    %c0_i32_0 = arith.constant 0 : i32
    %2 = arith.cmpi ne, %1, %c0_i32_0 : i32
    scf.if %2 {
      %c0_66 = arith.constant 0 : index
      %c0_67 = arith.constant 0 : index
      %c0_68 = arith.constant 0 : index
      %164 = vector.load %arg2[%c0_66, %c0_67, %c0_68] : memref<1x8x32xf32, #tpu.memory_space<vmem>>, vector<1x8x32xf32>
      %165 = vector.shape_cast %164 : vector<1x8x32xf32> to vector<8x32xf32>
      %c0_69 = arith.constant 0 : index
      %c0_70 = arith.constant 0 : index
      %166 = vector.load %arg19[%c0_69, %c0_70] : memref<8x32xf32, #tpu.memory_space<vmem>>, vector<8x32xf32>
      tpu.vector_store %arg19[%c0_69, %c0_70], %165 {strides = array<i32>} : memref<8x32xf32, #tpu.memory_space<vmem>>, vector<8x32xf32>,
    } else {
    }
    %c0 = arith.constant 0 : index
    %c0_1 = arith.constant 0 : index
    %3 = vector.load %arg19[%c0, %c0_1] : memref<8x32xf32, #tpu.memory_space<vmem>>, vector<8x32xf32>
    %c0_2 = arith.constant 0 : index
    %c0_3 = arith.constant 0 : index
    %c0_4 = arith.constant 0 : index
    %4 = vector.load %arg3[%c0_2, %c0_3, %c0_4] : memref<1x8x8xi8, #tpu.memory_space<vmem>>, vector<1x8x8xi8>
    %5 = vector.shape_cast %4 : vector<1x8x8xi8> to vector<8x8xi8>
    %6 = arith.sitofp %5 : vector<8x8xi8> to vector<8x8xf32>
    %cst = arith.constant 0.000000e+00 : f32
    %7 = vector.broadcast %cst : f32 to vector<8x8xf32>
    %8 = arith.cmpf one, %6, %7 : vector<8x8xf32>
    %cst_5 = arith.constant 0.000000e+00 : f32
    %cst_6 = arith.constant -1.000000e+30 : f32
    %9 = vector.broadcast %cst_5 : f32 to vector<8x8xf32>
    %10 = vector.broadcast %cst_6 : f32 to vector<8x8xf32>
    %11 = arith.select %8, %9, %10 : vector<8x8xi1>, vector<8x8xf32>
    %c0_7 = arith.constant 0 : index
    %c0_8 = arith.constant 0 : index
    %c0_9 = arith.constant 0 : index
    %12 = vector.load %arg4[%c0_7, %c0_8, %c0_9] : memref<1x1x32xf32, #tpu.memory_space<vmem>>, vector<1x1x32xf32>
    %13 = vector.shape_cast %12 : vector<1x1x32xf32> to vector<32xf32>
    %c0_10 = arith.constant 0 : index
    %c0_11 = arith.constant 0 : index
    %c0_12 = arith.constant 0 : index
    %14 = vector.load %arg5[%c0_10, %c0_11, %c0_12] : memref<1x1x32xf32, #tpu.memory_space<vmem>>, vector<1x1x32xf32>
    %15 = vector.shape_cast %14 : vector<1x1x32xf32> to vector<32xf32>
    %cst_13 = arith.constant dense<0.000000e+00> : vector<8xf32>
    %16 = vector.multi_reduction <add>, %3, %cst_13 [1] : vector<8x32xf32> to vector<8xf32>
    %17 = vector.shape_cast %16 : vector<8xf32> to vector<8x1xf32>
    %cst_14 = arith.constant 3.200000e+01 : f32
    %18 = vector.broadcast %cst_14 : f32 to vector<8x1xf32>
    %19 = arith.divf %17, %18 : vector<8x1xf32>
    %20 = vector.broadcast %19 : vector<8x1xf32> to vector<8x32xf32>
    %21 = arith.subf %3, %20 : vector<8x32xf32>
    %22 = arith.mulf %21, %21 : vector<8x32xf32>
    %cst_15 = arith.constant dense<0.000000e+00> : vector<8xf32>
    %23 = vector.multi_reduction <add>, %22, %cst_15 [1] : vector<8x32xf32> to vector<8xf32>
    %24 = vector.shape_cast %23 : vector<8xf32> to vector<8x1xf32>
    %cst_16 = arith.constant 3.200000e+01 : f32
    %25 = vector.broadcast %cst_16 : f32 to vector<8x1xf32>
    %26 = arith.divf %24, %25 : vector<8x1xf32>
    %27 = vector.broadcast %19 : vector<8x1xf32> to vector<8x32xf32>
    %28 = arith.subf %3, %27 : vector<8x32xf32>
    %cst_17 = arith.constant 9.99999974E-6 : f32
    %29 = vector.broadcast %cst_17 : f32 to vector<8x1xf32>
    %30 = arith.addf %26, %29 : vector<8x1xf32>
    %31 = math.rsqrt %30 : vector<8x1xf32>
    %32 = vector.broadcast %31 : vector<8x1xf32> to vector<8x32xf32>
    %33 = arith.mulf %28, %32 : vector<8x32xf32>
    %34 = vector.shape_cast %13 : vector<32xf32> to vector<1x32xf32>
    %35 = vector.broadcast %34 : vector<1x32xf32> to vector<8x32xf32>
    %36 = arith.mulf %33, %35 : vector<8x32xf32>
    %37 = vector.shape_cast %15 : vector<32xf32> to vector<1x32xf32>
    %38 = vector.broadcast %37 : vector<1x32xf32> to vector<8x32xf32>
    %39 = arith.addf %36, %38 : vector<8x32xf32>
    %c0_18 = arith.constant 0 : index
    %c0_19 = arith.constant 0 : index
    %c0_20 = arith.constant 0 : index
    %40 = vector.load %arg6[%c0_18, %c0_19, %c0_20] : memref<1x32x96xf32, #tpu.memory_space<vmem>>, vector<1x32x96xf32>
    %41 = vector.shape_cast %40 : vector<1x32x96xf32> to vector<32x96xf32>
    %cst_21 = arith.constant dense<0.000000e+00> : vector<8x96xf32>
    %42 = tpu.matmul %39, %41, %cst_21 {dimension_numbers = #tpu.dot_dimension_numbers<[1], [0], [0], [1], [0, 0, 1, 1], [], []>} : vector<8x32xf32>, vector<32x96xf32>, vector<8x96xf32> -> vector<8x96xf32>
    %c0_22 = arith.constant 0 : index
    %c0_23 = arith.constant 0 : index
    %c0_24 = arith.constant 0 : index
    %43 = vector.load %arg7[%c0_22, %c0_23, %c0_24] : memref<1x1x96xf32, #tpu.memory_space<vmem>>, vector<1x1x96xf32>
    %44 = vector.shape_cast %43 : vector<1x1x96xf32> to vector<96xf32>
    %45 = vector.shape_cast %44 : vector<96xf32> to vector<1x96xf32>
    %46 = vector.broadcast %45 : vector<1x96xf32> to vector<8x96xf32>
    %47 = arith.addf %42, %46 : vector<8x96xf32>
    %48 = vector.extract_strided_slice %47 {offsets = [0, 0], sizes = [8, 32], strides = [1, 1]} : vector<8x96xf32> to vector<8x32xf32>
    %cst_25 = arith.constant 0.353553385 : f32
    %49 = vector.broadcast %cst_25 : f32 to vector<8x32xf32>
    %50 = arith.mulf %48, %49 : vector<8x32xf32>
    %51 = vector.extract_strided_slice %47 {offsets = [0, 32], sizes = [8, 32], strides = [1, 1]} : vector<8x96xf32> to vector<8x32xf32>
    %52 = vector.extract_strided_slice %47 {offsets = [0, 64], sizes = [8, 32], strides = [1, 1]} : vector<8x96xf32> to vector<8x32xf32>
    %53 = vector.extract_strided_slice %50 {offsets = [0, 0], sizes = [8, 8], strides = [1, 1]} : vector<8x32xf32> to vector<8x8xf32>
    %54 = vector.extract_strided_slice %50 {offsets = [0, 8], sizes = [8, 8], strides = [1, 1]} : vector<8x32xf32> to vector<8x8xf32>
    %55 = vector.extract_strided_slice %50 {offsets = [0, 16], sizes = [8, 8], strides = [1, 1]} : vector<8x32xf32> to vector<8x8xf32>
    %56 = vector.extract_strided_slice %50 {offsets = [0, 24], sizes = [8, 8], strides = [1, 1]} : vector<8x32xf32> to vector<8x8xf32>
    %57 = vector.shape_cast %53 : vector<8x8xf32> to vector<1x8x8xf32>
    %58 = vector.shape_cast %54 : vector<8x8xf32> to vector<1x8x8xf32>
    %59 = vector.shape_cast %55 : vector<8x8xf32> to vector<1x8x8xf32>
    %60 = vector.shape_cast %56 : vector<8x8xf32> to vector<1x8x8xf32>
    %61 = tpu.concatenate %57, %58, %59, %60 in 0 : vector<1x8x8xf32>, vector<1x8x8xf32>, vector<1x8x8xf32>, vector<1x8x8xf32> -> vector<4x8x8xf32>
    %62 = vector.extract_strided_slice %51 {offsets = [0, 0], sizes = [8, 8], strides = [1, 1]} : vector<8x32xf32> to vector<8x8xf32>
    %63 = vector.extract_strided_slice %51 {offsets = [0, 8], sizes = [8, 8], strides = [1, 1]} : vector<8x32xf32> to vector<8x8xf32>
    %64 = vector.extract_strided_slice %51 {offsets = [0, 16], sizes = [8, 8], strides = [1, 1]} : vector<8x32xf32> to vector<8x8xf32>
    %65 = vector.extract_strided_slice %51 {offsets = [0, 24], sizes = [8, 8], strides = [1, 1]} : vector<8x32xf32> to vector<8x8xf32>
    %66 = vector.shape_cast %62 : vector<8x8xf32> to vector<1x8x8xf32>
    %67 = vector.shape_cast %63 : vector<8x8xf32> to vector<1x8x8xf32>
    %68 = vector.shape_cast %64 : vector<8x8xf32> to vector<1x8x8xf32>
    %69 = vector.shape_cast %65 : vector<8x8xf32> to vector<1x8x8xf32>
    %70 = tpu.concatenate %66, %67, %68, %69 in 0 : vector<1x8x8xf32>, vector<1x8x8xf32>, vector<1x8x8xf32>, vector<1x8x8xf32> -> vector<4x8x8xf32>
    %71 = vector.extract_strided_slice %52 {offsets = [0, 0], sizes = [8, 8], strides = [1, 1]} : vector<8x32xf32> to vector<8x8xf32>
    %72 = vector.extract_strided_slice %52 {offsets = [0, 8], sizes = [8, 8], strides = [1, 1]} : vector<8x32xf32> to vector<8x8xf32>
    %73 = vector.extract_strided_slice %52 {offsets = [0, 16], sizes = [8, 8], strides = [1, 1]} : vector<8x32xf32> to vector<8x8xf32>
    %74 = vector.extract_strided_slice %52 {offsets = [0, 24], sizes = [8, 8], strides = [1, 1]} : vector<8x32xf32> to vector<8x8xf32>
    %75 = vector.shape_cast %71 : vector<8x8xf32> to vector<1x8x8xf32>
    %76 = vector.shape_cast %72 : vector<8x8xf32> to vector<1x8x8xf32>
    %77 = vector.shape_cast %73 : vector<8x8xf32> to vector<1x8x8xf32>
    %78 = vector.shape_cast %74 : vector<8x8xf32> to vector<1x8x8xf32>
    %79 = tpu.concatenate %75, %76, %77, %78 in 0 : vector<1x8x8xf32>, vector<1x8x8xf32>, vector<1x8x8xf32>, vector<1x8x8xf32> -> vector<4x8x8xf32>
    "tpu.trace_start"() <{level = 10 : i32, message = "hqd,hkd->hqk"}> : () -> ()
    %cst_26 = arith.constant dense<0.000000e+00> : vector<4x8x8xf32>
    %80 = tpu.matmul %61, %70, %cst_26 {dimension_numbers = #tpu.dot_dimension_numbers<[2], [2], [1], [1], [0, 0, 0, 1, 1, 1], [0], [0]>} : vector<4x8x8xf32>, vector<4x8x8xf32>, vector<4x8x8xf32> -> vector<4x8x8xf32>
    "tpu.trace_stop"() : () -> ()
    %81 = vector.shape_cast %11 : vector<8x8xf32> to vector<1x8x8xf32>
    %82 = vector.broadcast %81 : vector<1x8x8xf32> to vector<4x8x8xf32>
    %83 = arith.addf %80, %82 : vector<4x8x8xf32>
    %cst_27 = arith.constant dense<0xFF800000> : vector<4x8xf32>
    %84 = vector.multi_reduction <maximumf>, %83, %cst_27 [2] : vector<4x8x8xf32> to vector<4x8xf32>
    %85 = vector.shape_cast %84 : vector<4x8xf32> to vector<4x8x1xf32>
    %86 = vector.broadcast %85 : vector<4x8x1xf32> to vector<4x8x8xf32>
    %87 = arith.subf %83, %86 : vector<4x8x8xf32>
    %88 = math.exp %87 : vector<4x8x8xf32>
    %cst_28 = arith.constant dense<0.000000e+00> : vector<4x8xf32>
    %89 = vector.multi_reduction <add>, %88, %cst_28 [2] : vector<4x8x8xf32> to vector<4x8xf32>
    %90 = vector.shape_cast %89 : vector<4x8xf32> to vector<4x8x1xf32>
    %91 = tpu.reciprocal %90 {approx = true} : vector<4x8x1xf32> -> vector<4x8x1xf32>
    %92 = vector.broadcast %91 : vector<4x8x1xf32> to vector<4x8x8xf32>
    %93 = arith.mulf %88, %92 : vector<4x8x8xf32>
    "tpu.trace_start"() <{level = 10 : i32, message = "hqk,hkd->hqd"}> : () -> ()
    %cst_29 = arith.constant dense<0.000000e+00> : vector<4x8x8xf32>
    %94 = tpu.matmul %93, %79, %cst_29 {dimension_numbers = #tpu.dot_dimension_numbers<[2], [1], [1], [2], [0, 0, 0, 1, 1, 2], [0], [0]>} : vector<4x8x8xf32>, vector<4x8x8xf32>, vector<4x8x8xf32> -> vector<4x8x8xf32>
    "tpu.trace_stop"() : () -> ()
    %95 = vector.extract_strided_slice %94 {offsets = [0, 0, 0], sizes = [1, 8, 8], strides = [1, 1, 1]} : vector<4x8x8xf32> to vector<1x8x8xf32>
    %96 = vector.shape_cast %95 : vector<1x8x8xf32> to vector<8x8xf32>
    %97 = vector.extract_strided_slice %94 {offsets = [1, 0, 0], sizes = [1, 8, 8], strides = [1, 1, 1]} : vector<4x8x8xf32> to vector<1x8x8xf32>
    %98 = vector.shape_cast %97 : vector<1x8x8xf32> to vector<8x8xf32>
    %99 = vector.extract_strided_slice %94 {offsets = [2, 0, 0], sizes = [1, 8, 8], strides = [1, 1, 1]} : vector<4x8x8xf32> to vector<1x8x8xf32>
    %100 = vector.shape_cast %99 : vector<1x8x8xf32> to vector<8x8xf32>
    %101 = vector.extract_strided_slice %94 {offsets = [3, 0, 0], sizes = [1, 8, 8], strides = [1, 1, 1]} : vector<4x8x8xf32> to vector<1x8x8xf32>
    %102 = vector.shape_cast %101 : vector<1x8x8xf32> to vector<8x8xf32>
    %103 = tpu.concatenate %96, %98, %100, %102 in 1 : vector<8x8xf32>, vector<8x8xf32>, vector<8x8xf32>, vector<8x8xf32> -> vector<8x32xf32>
    %c0_30 = arith.constant 0 : index
    %c0_31 = arith.constant 0 : index
    %c0_32 = arith.constant 0 : index
    %104 = vector.load %arg8[%c0_30, %c0_31, %c0_32] : memref<1x32x32xf32, #tpu.memory_space<vmem>>, vector<1x32x32xf32>
    %105 = vector.shape_cast %104 : vector<1x32x32xf32> to vector<32x32xf32>
    %cst_33 = arith.constant dense<0.000000e+00> : vector<8x32xf32>
    %106 = tpu.matmul %103, %105, %cst_33 {dimension_numbers = #tpu.dot_dimension_numbers<[1], [0], [0], [1], [0, 0, 1, 1], [], []>} : vector<8x32xf32>, vector<32x32xf32>, vector<8x32xf32> -> vector<8x32xf32>
    %c0_34 = arith.constant 0 : index
    %c0_35 = arith.constant 0 : index
    %c0_36 = arith.constant 0 : index
    %107 = vector.load %arg9[%c0_34, %c0_35, %c0_36] : memref<1x1x32xf32, #tpu.memory_space<vmem>>, vector<1x1x32xf32>
    %108 = vector.shape_cast %107 : vector<1x1x32xf32> to vector<32xf32>
    %109 = vector.shape_cast %108 : vector<32xf32> to vector<1x32xf32>
    %110 = vector.broadcast %109 : vector<1x32xf32> to vector<8x32xf32>
    %111 = arith.addf %106, %110 : vector<8x32xf32>
    %112 = arith.addf %3, %111 : vector<8x32xf32>
    %c0_37 = arith.constant 0 : index
    %c0_38 = arith.constant 0 : index
    %c0_39 = arith.constant 0 : index
    %113 = vector.load %arg10[%c0_37, %c0_38, %c0_39] : memref<1x1x32xf32, #tpu.memory_space<vmem>>, vector<1x1x32xf32>
    %114 = vector.shape_cast %113 : vector<1x1x32xf32> to vector<32xf32>
    %c0_40 = arith.constant 0 : index
    %c0_41 = arith.constant 0 : index
    %c0_42 = arith.constant 0 : index
    %115 = vector.load %arg11[%c0_40, %c0_41, %c0_42] : memref<1x1x32xf32, #tpu.memory_space<vmem>>, vector<1x1x32xf32>
    %116 = vector.shape_cast %115 : vector<1x1x32xf32> to vector<32xf32>
    %cst_43 = arith.constant dense<0.000000e+00> : vector<8xf32>
    %117 = vector.multi_reduction <add>, %112, %cst_43 [1] : vector<8x32xf32> to vector<8xf32>
    %118 = vector.shape_cast %117 : vector<8xf32> to vector<8x1xf32>
    %cst_44 = arith.constant 3.200000e+01 : f32
    %119 = vector.broadcast %cst_44 : f32 to vector<8x1xf32>
    %120 = arith.divf %118, %119 : vector<8x1xf32>
    %121 = vector.broadcast %120 : vector<8x1xf32> to vector<8x32xf32>
    %122 = arith.subf %112, %121 : vector<8x32xf32>
    %123 = arith.mulf %122, %122 : vector<8x32xf32>
    %cst_45 = arith.constant dense<0.000000e+00> : vector<8xf32>
    %124 = vector.multi_reduction <add>, %123, %cst_45 [1] : vector<8x32xf32> to vector<8xf32>
    %125 = vector.shape_cast %124 : vector<8xf32> to vector<8x1xf32>
    %cst_46 = arith.constant 3.200000e+01 : f32
    %126 = vector.broadcast %cst_46 : f32 to vector<8x1xf32>
    %127 = arith.divf %125, %126 : vector<8x1xf32>
    %128 = vector.broadcast %120 : vector<8x1xf32> to vector<8x32xf32>
    %129 = arith.subf %112, %128 : vector<8x32xf32>
    %cst_47 = arith.constant 9.99999974E-6 : f32
    %130 = vector.broadcast %cst_47 : f32 to vector<8x1xf32>
    %131 = arith.addf %127, %130 : vector<8x1xf32>
    %132 = math.rsqrt %131 : vector<8x1xf32>
    %133 = vector.broadcast %132 : vector<8x1xf32> to vector<8x32xf32>
    %134 = arith.mulf %129, %133 : vector<8x32xf32>
    %135 = vector.shape_cast %114 : vector<32xf32> to vector<1x32xf32>
    %136 = vector.broadcast %135 : vector<1x32xf32> to vector<8x32xf32>
    %137 = arith.mulf %134, %136 : vector<8x32xf32>
    %138 = vector.shape_cast %116 : vector<32xf32> to vector<1x32xf32>
    %139 = vector.broadcast %138 : vector<1x32xf32> to vector<8x32xf32>
    %140 = arith.addf %137, %139 : vector<8x32xf32>
    %c0_48 = arith.constant 0 : index
    %c0_49 = arith.constant 0 : index
    %c0_50 = arith.constant 0 : index
    %141 = vector.load %arg12[%c0_48, %c0_49, %c0_50] : memref<1x32x64xf32, #tpu.memory_space<vmem>>, vector<1x32x64xf32>
    %142 = vector.shape_cast %141 : vector<1x32x64xf32> to vector<32x64xf32>
    %cst_51 = arith.constant dense<0.000000e+00> : vector<8x64xf32>
    %143 = tpu.matmul %140, %142, %cst_51 {dimension_numbers = #tpu.dot_dimension_numbers<[1], [0], [0], [1], [0, 0, 1, 1], [], []>} : vector<8x32xf32>, vector<32x64xf32>, vector<8x64xf32> -> vector<8x64xf32>
    %c0_52 = arith.constant 0 : index
    %c0_53 = arith.constant 0 : index
    %c0_54 = arith.constant 0 : index
    %144 = vector.load %arg13[%c0_52, %c0_53, %c0_54] : memref<1x1x64xf32, #tpu.memory_space<vmem>>, vector<1x1x64xf32>
    %145 = vector.shape_cast %144 : vector<1x1x64xf32> to vector<64xf32>
    %146 = vector.shape_cast %145 : vector<64xf32> to vector<1x64xf32>
    %147 = vector.broadcast %146 : vector<1x64xf32> to vector<8x64xf32>
    %148 = arith.addf %143, %147 : vector<8x64xf32>
    %cst_55 = arith.constant 0.000000e+00 : f32
    %149 = vector.broadcast %cst_55 : f32 to vector<8x64xf32>
    %150 = arith.maximumf %148, %149 : vector<8x64xf32>
    %c0_56 = arith.constant 0 : index
    %c0_57 = arith.constant 0 : index
    %c0_58 = arith.constant 0 : index
    %151 = vector.load %arg14[%c0_56, %c0_57, %c0_58] : memref<1x64x32xf32, #tpu.memory_space<vmem>>, vector<1x64x32xf32>
    %152 = vector.shape_cast %151 : vector<1x64x32xf32> to vector<64x32xf32>
    %cst_59 = arith.constant dense<0.000000e+00> : vector<8x32xf32>
    %153 = tpu.matmul %150, %152, %cst_59 {dimension_numbers = #tpu.dot_dimension_numbers<[1], [0], [0], [1], [0, 0, 1, 1], [], []>} : vector<8x64xf32>, vector<64x32xf32>, vector<8x32xf32> -> vector<8x32xf32>
    %c0_60 = arith.constant 0 : index
    %c0_61 = arith.constant 0 : index
    %c0_62 = arith.constant 0 : index
    %154 = vector.load %arg15[%c0_60, %c0_61, %c0_62] : memref<1x1x32xf32, #tpu.memory_space<vmem>>, vector<1x1x32xf32>
    %155 = vector.shape_cast %154 : vector<1x1x32xf32> to vector<32xf32>
    %156 = vector.shape_cast %155 : vector<32xf32> to vector<1x32xf32>
    %157 = vector.broadcast %156 : vector<1x32xf32> to vector<8x32xf32>
    %158 = arith.addf %153, %157 : vector<8x32xf32>
    %159 = arith.addf %112, %158 : vector<8x32xf32>
    %c0_63 = arith.constant 0 : index
    %c0_64 = arith.constant 0 : index
    %160 = vector.load %arg19[%c0_63, %c0_64] : memref<8x32xf32, #tpu.memory_space<vmem>>, vector<8x32xf32>
    tpu.vector_store %arg19[%c0_63, %c0_64], %159 {strides = array<i32>} : memref<8x32xf32, #tpu.memory_space<vmem>>, vector<8x32xf32>,
    %c1_i32 = arith.constant 1 : i32
    %161 = arith.cmpi eq, %arg1, %c1_i32 : i32
    %162 = arith.extui %161 : i1 to i32
    %c0_i32_65 = arith.constant 0 : i32
    %163 = arith.cmpi ne, %162, %c0_i32_65 : i32
    scf.if %163 {
      %c0_66 = arith.constant 0 : index
      %c0_67 = arith.constant 0 : index
      %164 = vector.load %arg16[%c0_66, %c0_67] : memref<1x32xf32, #tpu.memory_space<vmem>>, vector<1x32xf32>
      %165 = vector.shape_cast %164 : vector<1x32xf32> to vector<32xf32>
      %c0_68 = arith.constant 0 : index
      %c0_69 = arith.constant 0 : index
      %166 = vector.load %arg17[%c0_68, %c0_69] : memref<1x32xf32, #tpu.memory_space<vmem>>, vector<1x32xf32>
      %167 = vector.shape_cast %166 : vector<1x32xf32> to vector<32xf32>
      %cst_70 = arith.constant dense<0.000000e+00> : vector<8xf32>
      %168 = vector.multi_reduction <add>, %159, %cst_70 [1] : vector<8x32xf32> to vector<8xf32>
      %169 = vector.shape_cast %168 : vector<8xf32> to vector<8x1xf32>
      %cst_71 = arith.constant 3.200000e+01 : f32
      %170 = vector.broadcast %cst_71 : f32 to vector<8x1xf32>
      %171 = arith.divf %169, %170 : vector<8x1xf32>
      %172 = vector.broadcast %171 : vector<8x1xf32> to vector<8x32xf32>
      %173 = arith.subf %159, %172 : vector<8x32xf32>
      %174 = arith.mulf %173, %173 : vector<8x32xf32>
      %cst_72 = arith.constant dense<0.000000e+00> : vector<8xf32>
      %175 = vector.multi_reduction <add>, %174, %cst_72 [1] : vector<8x32xf32> to vector<8xf32>
      %176 = vector.shape_cast %175 : vector<8xf32> to vector<8x1xf32>
      %cst_73 = arith.constant 3.200000e+01 : f32
      %177 = vector.broadcast %cst_73 : f32 to vector<8x1xf32>
      %178 = arith.divf %176, %177 : vector<8x1xf32>
      %179 = vector.broadcast %171 : vector<8x1xf32> to vector<8x32xf32>
      %180 = arith.subf %159, %179 : vector<8x32xf32>
      %cst_74 = arith.constant 9.99999974E-6 : f32
      %181 = vector.broadcast %cst_74 : f32 to vector<8x1xf32>
      %182 = arith.addf %178, %181 : vector<8x1xf32>
      %183 = math.rsqrt %182 : vector<8x1xf32>
      %184 = vector.broadcast %183 : vector<8x1xf32> to vector<8x32xf32>
      %185 = arith.mulf %180, %184 : vector<8x32xf32>
      %186 = vector.shape_cast %165 : vector<32xf32> to vector<1x32xf32>
      %187 = vector.broadcast %186 : vector<1x32xf32> to vector<8x32xf32>
      %188 = arith.mulf %185, %187 : vector<8x32xf32>
      %189 = vector.shape_cast %167 : vector<32xf32> to vector<1x32xf32>
      %190 = vector.broadcast %189 : vector<1x32xf32> to vector<8x32xf32>
      %191 = arith.addf %188, %190 : vector<8x32xf32>
      %c0_75 = arith.constant 0 : index
      %c0_76 = arith.constant 0 : index
      %c0_77 = arith.constant 0 : index
      %192 = vector.load %arg18[%c0_75, %c0_76, %c0_77] : memref<1x8x32xf32, #tpu.memory_space<vmem>>, vector<1x8x32xf32>
      %193 = vector.shape_cast %192 : vector<1x8x32xf32> to vector<8x32xf32>
      %194 = vector.shape_cast %191 : vector<8x32xf32> to vector<1x8x32xf32>
      tpu.vector_store %arg18[%c0_75, %c0_76, %c0_77], %194 {strides = array<i32>} : memref<1x8x32xf32, #tpu.memory_space<vmem>>, vector<1x8x32xf32>,
    } else {
    }
    return
  }
  func.func @transform_0(%arg0: i32, %arg1: i32) -> (i32, i32, i32) {
    %c0_i32 = arith.constant 0 : i32
    %c0_i32_0 = arith.constant 0 : i32
    %c0_i32_1 = arith.constant 0 : i32
    return %arg0, %c0_i32, %c0_i32_0 : i32, i32, i32
  }
  func.func @transform_1(%arg0: i32, %arg1: i32) -> (i32, i32, i32) {
    %c0_i32 = arith.constant 0 : i32
    %c0_i32_0 = arith.constant 0 : i32
    %c0_i32_1 = arith.constant 0 : i32
    return %arg0, %c0_i32, %c0_i32_0 : i32, i32, i32
  }
  func.func @transform_2(%arg0: i32, %arg1: i32) -> (i32, i32, i32) {
    %c0_i32 = arith.constant 0 : i32
    %c0_i32_0 = arith.constant 0 : i32
    %c0_i32_1 = arith.constant 0 : i32
    return %arg1, %c0_i32, %c0_i32_0 : i32, i32, i32
  }
  func.func @transform_3(%arg0: i32, %arg1: i32) -> (i32, i32, i32) {
    %c0_i32 = arith.constant 0 : i32
    %c0_i32_0 = arith.constant 0 : i32
    %c0_i32_1 = arith.constant 0 : i32
    return %arg1, %c0_i32, %c0_i32_0 : i32, i32, i32
  }
  func.func @transform_4(%arg0: i32, %arg1: i32) -> (i32, i32, i32) {
    %c0_i32 = arith.constant 0 : i32
    %c0_i32_0 = arith.constant 0 : i32
    %c0_i32_1 = arith.constant 0 : i32
    return %arg1, %c0_i32, %c0_i32_0 : i32, i32, i32
  }
  func.func @transform_5(%arg0: i32, %arg1: i32) -> (i32, i32, i32) {
    %c0_i32 = arith.constant 0 : i32
    %c0_i32_0 = arith.constant 0 : i32
    %c0_i32_1 = arith.constant 0 : i32
    return %arg1, %c0_i32, %c0_i32_0 : i32, i32, i32
  }
  func.func @transform_6(%arg0: i32, %arg1: i32) -> (i32, i32, i32) {
    %c0_i32 = arith.constant 0 : i32
    %c0_i32_0 = arith.constant 0 : i32
    %c0_i32_1 = arith.constant 0 : i32
    return %arg1, %c0_i32, %c0_i32_0 : i32, i32, i32
  }
  func.func @transform_7(%arg0: i32, %arg1: i32) -> (i32, i32, i32) {
    %c0_i32 = arith.constant 0 : i32
    %c0_i32_0 = arith.constant 0 : i32
    %c0_i32_1 = arith.constant 0 : i32
    return %arg1, %c0_i32, %c0_i32_0 : i32, i32, i32
  }
  func.func @transform_8(%arg0: i32, %arg1: i32) -> (i32, i32, i32) {
    %c0_i32 = arith.constant 0 : i32
    %c0_i32_0 = arith.constant 0 : i32
    %c0_i32_1 = arith.constant 0 : i32
    return %arg1, %c0_i32, %c0_i32_0 : i32, i32, i32
  }
  func.func @transform_9(%arg0: i32, %arg1: i32) -> (i32, i32, i32) {
    %c0_i32 = arith.constant 0 : i32
    %c0_i32_0 = arith.constant 0 : i32
    %c0_i32_1 = arith.constant 0 : i32
    return %arg1, %c0_i32, %c0_i32_0 : i32, i32, i32
  }
  func.func @transform_10(%arg0: i32, %arg1: i32) -> (i32, i32, i32) {
    %c0_i32 = arith.constant 0 : i32
    %c0_i32_0 = arith.constant 0 : i32
    %c0_i32_1 = arith.constant 0 : i32
    return %arg1, %c0_i32, %c0_i32_0 : i32, i32, i32
  }
  func.func @transform_11(%arg0: i32, %arg1: i32) -> (i32, i32, i32) {
    %c0_i32 = arith.constant 0 : i32
    %c0_i32_0 = arith.constant 0 : i32
    %c0_i32_1 = arith.constant 0 : i32
    return %arg1, %c0_i32, %c0_i32_0 : i32, i32, i32
  }
  func.func @transform_12(%arg0: i32, %arg1: i32) -> (i32, i32, i32) {
    %c0_i32 = arith.constant 0 : i32
    %c0_i32_0 = arith.constant 0 : i32
    %c0_i32_1 = arith.constant 0 : i32
    return %arg1, %c0_i32, %c0_i32_0 : i32, i32, i32
  }
  func.func @transform_13(%arg0: i32, %arg1: i32) -> (i32, i32, i32) {
    %c0_i32 = arith.constant 0 : i32
    %c0_i32_0 = arith.constant 0 : i32
    %c0_i32_1 = arith.constant 0 : i32
    return %arg1, %c0_i32, %c0_i32_0 : i32, i32, i32
  }
  func.func @transform_14(%arg0: i32, %arg1: i32) -> (i32, i32) {
    %c0_i32 = arith.constant 0 : i32
    %c0_i32_0 = arith.constant 0 : i32
    %c0_i32_1 = arith.constant 0 : i32
    return %c0_i32, %c0_i32_0 : i32, i32
  }
  func.func @transform_15(%arg0: i32, %arg1: i32) -> (i32, i32) {
    %c0_i32 = arith.constant 0 : i32
    %c0_i32_0 = arith.constant 0 : i32
    %c0_i32_1 = arith.constant 0 : i32
    return %c0_i32, %c0_i32_0 : i32, i32
  }
  func.func @transform_16(%arg0: i32, %arg1: i32) -> (i32, i32, i32) {
    %c0_i32 = arith.constant 0 : i32
    %c0_i32_0 = arith.constant 0 : i32
    %c0_i32_1 = arith.constant 0 : i32
    return %arg0, %c0_i32, %c0_i32_0 : i32, i32, i32
  }
}

</mosaic_0001>

<bundles_post_ra>
// kernel: encoder_forward.1
= control target key start
LH: loop header
LB: loop body
LE: loop exit
PB: predicated region body
PF: predicated region fallthrough
CT: control target
= control target key end

     0   :  { %s3220_s0 = inlined_call_operand.vmem [shape: f32[2,8,32], index: 0, kind: input, shape index: {}]   ;;  %s3221_s1 = inlined_call_operand.vmem [shape: s8[2,8,8], index: 1, kind: input, shape index: {}]   ;;  %s3222_s2 = inlined_call_operand.vmem [shape: f32[2,1,32], index: 2, kind: input, shape index: {}]   ;;  %s3223_s3 = inlined_call_operand.vmem [shape: f32[2,1,32], index: 3, kind: input, shape index: {}]   ;;  %s3224_s4 = inlined_call_operand.vmem [shape: f32[2,32,96], index: 4, kind: input, shape index: {}]   ;;  %s3225_s5 = inlined_call_operand.vmem [shape: f32[2,1,96], index: 5, kind: input, shape index: {}]   ;;  %s3226_s6 = inlined_call_operand.vmem [shape: f32[2,32,32], index: 6, kind: input, shape index: {}]   ;;  %s3227_s7 = inlined_call_operand.vmem [shape: f32[2,1,32], index: 7, kind: input, shape index: {}]   ;;  %s3228_s8 = inlined_call_operand.vmem [shape: f32[2,1,32], index: 8, kind: input, shape index: {}]   ;;  %s3229_s9 = inlined_call_operand.vmem [shape: f32[2,1,32], index: 9, kind: input, shape index: {}]   ;;  %s3230_s10 = inlined_call_operand.vmem [shape: f32[2,32,64], index: 10, kind: input, shape index: {}]   ;;  %s3231_s11 = inlined_call_operand.hbm [shape: f32[2,1,64], index: 11, kind: input, shape index: {}]   ;;  %s3232_s12 = inlined_call_operand.vmem [shape: f32[2,64,32], index: 12, kind: input, shape index: {}]   ;;  %s3233_s13 = inlined_call_operand.hbm [shape: f32[2,1,32], index: 13, kind: input, shape index: {}]   ;;  %s3234_s14 = inlined_call_operand.vmem [shape: f32[1,32], index: 14, kind: input, shape index: {}]   ;;  %s3235_s15 = inlined_call_operand.vmem [shape: f32[1,32], index: 15, kind: input, shape index: {}]   ;;  %s3236_s16 = inlined_call_operand.hbm [shape: f32[2,8,32], index: 16, kind: output, shape index: {}]  }
   0x1   :  { %3257 = sst [smem:[#allocation29_spill]] %s3220_s0 }
   0x2   :  { %3258 = sst [smem:[#allocation30_spill]] %s3221_s1 }
   0x3   :  { %3259 = sst [smem:[#allocation31_spill]] %s3224_s4 }
   0x4   :  { %3260 = sst [smem:[#allocation32_spill]] %s3226_s6 }
   0x5   :  { %3261 = sst [smem:[#allocation33_spill]] %s3229_s9 }
   0x6   :  { %3262 = sst [smem:[#allocation34_spill]] %s3230_s10 }
   0x7   :  { %3263 = sst [smem:[#allocation35_spill]] %s3231_s11 }
   0x8   :  { %3264 = sst [smem:[#allocation36_spill]] %s3232_s12 }
   0x9   :  { %3265 = sst [smem:[#allocation37_spill]] %s3233_s13 }
   0xa   :  { %3266 = sst [smem:[#allocation38_spill]] %s3234_s14 }
   0xb   :  { %3267 = sst [smem:[#allocation39_spill]] %s3235_s15 }
   0xc   :  { %3268 = sst [smem:[#allocation40_spill]] %s3236_s16 }
   0xd   :  { %21 = vsyncpa [#allocation4], 0 }
   0xe   :  { %23 = vsyncpa [#allocation4 + $0x1], 0 }
   0xf   :  { %24 = vsyncpa [#allocation7], 0 }
  0x10   :  { %26 = vsyncpa [#allocation7 + $0x1], 0 }
  0x11   :  { %27 = vsyncpa [#allocation5], 0 }
  0x12   :  { %29 = vsyncpa [#allocation5 + $0x1], 0  ;;  %s2760_s21 = smov 0   ;;  %s2762_s22 = smov 0  }
  0x13   :  { %s2764_s23 = smov 0   ;;  %s2766_s24 = smov 0  }
  0x14   :  { %s2768_s25 = smov 0   ;;  %s2770_s26 = smov 0  }
  0x15   :  { %s2772_s27 = smov 0   ;;  %s2774_s28 = smov 0  }
  0x16   :  { %s2776_s29 = smov 0   ;;  %s2778_s30 = smov 0  }
  0x17   :  { %s2780_s0 = smov 0  }
  0x18 LB: > { %3269 = sst [smem:[#allocation12_spill]] %s2619_s21  ;;  %s2153_s17 = sadd.s32 4294967295, %s2659_s0   ;;  %s2659_s0 = sphi %s2780_s0, %s35_s0   ;;  %s2655_s30 = sphi %s2778_s30, %s3328_s30   ;;  %s2651_s29 = sphi %s2776_s29, %s3327_s29   ;;  %s2647_s28 = sphi %s2774_s28, %s3326_s28   ;;  %s2643_s27 = sphi %s2772_s27, %s3325_s27   ;;  %s2639_s26 = sphi %s2770_s26, %s3324_s26   ;;  %s2635_s25 = sphi %s2768_s25, %s3323_s25   ;;  %s2631_s24 = sphi %s2766_s24, %s3322_s24   ;;  %s2627_s23 = sphi %s2764_s23, %s3321_s23   ;;  %s2623_s22 = sphi %s2762_s22, %s3320_s22   ;;  %s2619_s21 = sphi %s2760_s21, %s3319_s21  }
  0x19   : > { %3270 = sst [smem:[#allocation13_spill]] %s2623_s22  ;;  %s2154_s18 = sadd.s32 4294967294, %s2659_s0  }
  0x1a   : > { %3271 = sst [smem:[#allocation14_spill]] %s2627_s23  ;;  %s44_s19 = sadd.s32 1, %s2651_s29 }
  0x1b   : > { %3272 = sst [smem:[#allocation15_spill]] %s2635_s25  ;;  %s47_s20 = sadd.s32 1, %s2655_s30 }
  0x1c   : > { %3273 = sst [smem:[#allocation16_spill]] %s2639_s26  ;;  %p45_p0 = scmp.ge.s32.totalorder %s44_s19, 2 }
  0x1d   : > { %3274 = sst [smem:[#allocation17_spill]] %s2647_s28  ;;  %s340_s16 = sadd.s32 1, %s2639_s26 }
  0x1e   : > { %3275 = sst [smem:[#allocation18_spill]] %s2651_s29  ;;  %p347_p1 = scmp.ne.s32.totalorder %s2639_s26, %s2635_s25 }
  0x1f   : > { %3276 = sst [smem:[#allocation19_spill]] %s2655_s30  ;;  %p348_p2 = scmp.eq.s32.totalorder %s2659_s0, 0 }
  0x20   : > { %3277 = sst [smem:[#allocation20_spill]] %s2659_s0  ;;  %s3330_s19 = smov (%p45_p0, %s44_s19), 0 }
  0x21   : > { %3278 = sst [smem:[#allocation21_spill]] %s3330_s19  ;;  %s3332_s20 = smov (!%p45_p0, %s47_s20), %s2655_s30 }
  0x22   : > { %s337_s15 = ssub.s32 %s2651_s29, %s3330_s19  ;;  %p2826_p3 = por %p348_p2, %p347_p1 }
  0x23   : > { %p49_p4 = scmp.ge.s32.totalorder %s3332_s20, 2  ;;  %p338_p5 = scmp.eq.s32.totalorder %s337_s15, 0 }
  0x24   : > { %p353_p6 = scmp.ne.s32.totalorder %s2635_s25, %s2631_s24  ;;  %p354_p7 = scmp.eq.s32.totalorder %s2153_s17, 0 }
  0x25   : > { %s3334_s20 = smov (%p49_p4, %s3332_s20), 0  ;;  %s460_s9 = sadd.s32 1, %s2627_s23 }
  0x26   : > { %3280 = sst [smem:[#allocation22_spill]] %s3334_s20  ;;  %p2836_p8 = por %p354_p7, %p353_p6 }
  0x27   : > { %s2834_s12 = scalar_select %p338_p5, %s2639_s26, %s340_s16  }
  0x28   : > { %s457_s10 = ssub.s32 %s2655_s30, %s3334_s20  ;;  %p470_p10 = scmp.ne.s32.totalorder %s2627_s23, %s2623_s22 }
  0x29   : > { %3281 = sst [smem:[#allocation23_spill]] %s2834_s12  ;;  %p458_p9 = scmp.eq.s32.totalorder %s457_s10, 0 }
  0x2a   : > { %p471_p11 = scmp.eq.s32.totalorder %s2153_s17, 3  ;;  %p476_p13 = scmp.ne.s32.totalorder %s2623_s22, %s2619_s21 }
  0x2b   : > { %s2846_s15 = scalar_select %p458_p9, %s2627_s23, %s460_s9  }
  0x2c   : > { %p2848_p12 = por %p471_p11, %p470_p10  ;;  %p477_p0 = scmp.eq.s32.totalorder %s2154_s18, 3 }
  0x2d   : > { %3283 = sst [smem:[#allocation24_spill]] %s2846_s15  ;;  %p2356_p1 = scmp.lt.s32.totalorder %s2659_s0, 4 }
  0x2e   : > { %s3284_s24 = scalar_select %p2848_p12, 1, 0 }
  0x2f   : > { %s2856_s16 = sand.u32 1, %s2639_s26   ;;  %p2858_p2 = por %p477_p0, %p476_p13 }
  0x30   : > { %3285 = sst [smem:[#allocation25_spill]] %s3284_s24  ;;  %s2157_s20 = sshll.u32 %s2651_s29, 4 }
  0x31   : > { %s3286_s10 = scalar_select %p2858_p2, 1, 0 }
  0x32   : > { %s3288_s11 = sld [smem:[#allocation35_spill]]  ;;  %s580_s12 = scalar_lea.vmem [#allocation3], %s2856_s16 }
  0x33   : > { %3287 = sst [smem:[#allocation26_spill]] %s3286_s10  ;;  %s587_s15 = sshll.u32 %s580_s12, 4  ;;  %s588_s15 = int_to_ptr.vmem [resolvable:$true] %s587_s15 }
  0x34   : > { %p2869_p4 = pnand %p2356_p1, %p2826_p3  ;;  %p2159_p5 = scmp.ge.s32.totalorder %s2659_s0, 1 }
  0x35   : > { %p617_p6 = scmp.lt.s32.totalorder %s2659_s0, 5  ;;  %s578_s26 = scalar_lea.sflag [#allocation4], %s2856_s16 }
  0x36   : > { %p2481_p7 = pneg %p2869_p4  ;;  %s2492_s29 = scalar_lea.vmem %s588_s15, 16 }
  0x37   : > { %p2493_p9 = scmp.ne.s32.totalorder %s588_s15, %s2492_s29  ;;  %s2661_s12 = smov [#allocation3]  }
  0x38   : > { %s585_s9 = scalar_lea.hbm %s3288_s11, %s2157_s20  ;;  %s2497_s30 = sshll.u32 %s2661_s12, 4  ;;  %s2498_s30 = int_to_ptr.vmem [resolvable:$false] %s2497_s30 }
  0x39   : > { %p2495_p10 = pnand %p2493_p9, %p2481_p7  ;;  %s2499_s14 = scalar_lea.vmem %s2498_s30, 32 }
  0x3a   : > { %p2500_p3 = scmp.lt.s32.totalorder %s588_s15, %s2498_s30  ;;  %p2501_p13 = scmp.lt.s32.totalorder %s2499_s14, %s2492_s29 }
  0x3b   : > { %p2496_p11 = pneg %p2495_p10 }
  0x3c   : > { %p2502_p0 = por %p2501_p13, %p2500_p3 }
  0x3e   : > { %p2503_p1 = pnand %p2502_p0, %p2496_p11 }
  0x40   : > { %2506 = shalt.err (!%p2503_p1)
}
  0x41   : > { %2348 = dma.hbm_to_vmem [thread:$0]  (!%p2869_p4), %s585_s9, 16, %s588_s15, %s578_s26  }
  0x42   : > { %p2887_p9 = pnand %p2159_p5, %p617_p6  ;;  %s3291_s13 = sld [smem:[#allocation37_spill]] }
  0x43   : > { %s605_s14 = scalar_lea.vmem [#allocation6], %s2856_s16  ;;  %s603_s23 = scalar_lea.sflag [#allocation7], %s2856_s16 }
  0x44   : > { %s612_s11 = sshll.u32 %s605_s14, 4  ;;  %s2662_s26 = smov [#allocation6]   ;;  %s613_s11 = int_to_ptr.vmem [resolvable:$true] %s612_s11 }
  0x45   : > { %s2520_s10 = scalar_lea.vmem %s613_s11, 16  ;;  %s2525_s15 = sshll.u32 %s2662_s26, 4  ;;  %s2526_s15 = int_to_ptr.vmem [resolvable:$false] %s2525_s15 }
  0x46   : > { %p2521_p10 = scmp.ne.s32.totalorder %s613_s11, %s2520_s10  ;;  %s2527_s9 = scalar_lea.vmem %s2526_s15, 32 }
  0x47   : > { %p2528_p5 = scmp.lt.s32.totalorder %s613_s11, %s2526_s15  ;;  %p2529_p6 = scmp.lt.s32.totalorder %s2527_s9, %s2520_s10 }
  0x48   : > { %s610_s29 = scalar_lea.hbm %s3291_s13, %s2157_s20  ;;  %p2523_p11 = pnand %p2521_p10, %p2481_p7 }
  0x49   : > { %p2530_p13 = por %p2529_p6, %p2528_p5 }
  0x4a   : > { %p2524_p3 = pneg %p2523_p11 }
  0x4c   : > { %p2531_p0 = pnand %p2530_p13, %p2524_p3 }
  0x4e   : > { %2534 = shalt.err (!%p2531_p0)
}
  0x4f   : > { %2351 = dma.hbm_to_vmem [thread:$0]  (!%p2869_p4), %s610_s29, 16, %s613_s11, %s603_s23  }
  0x50   : > { %621 = sbr.rel (%p2887_p9) target bundleno = 2914 (0xb62), region = 84 }
  0x55   : > { %s2904_s20 = sand.u32 1, %s2635_s25  }
  0x56   : > { %3292 = sst [smem:[#allocation27_spill]] %s2904_s20  ;;  %s624_s16 = scalar_lea.sflag [#allocation4], %s2904_s20 }
  0x57   : > { %2606 = dma.done.wait (%p2836_p8), %s624_s16, 16  }
  0x58   : > { %2608 = vsyncadd (%p2836_p8), %s624_s16, 4294967280  ;;  %s632_s11 = scalar_lea.sflag [#allocation7], %s2904_s20 }
  0x59   : > { %2610 = dma.done.wait (%p2836_p8), %s632_s11, 16  }
  0x5a   : > { %2612 = vsyncadd (%p2836_p8), %s632_s11, 4294967280  ;;  %s3245_s10 = sand.u32 1, %s2623_s22   ;;  %p732_p4 = scmp.lt.s32.totalorder %s2647_s28, 1 }
  0x5b   : > { %s2922_s18 = sshll.u32 %s3245_s10, 3  ;;  %p740_p7 = scmp.lt.s32.totalorder %s2643_s27, 1 }
  0x5c   : > { %s733_s17 = scalar_select %p732_p4, %s2647_s28, 1 }
  0x5d   : > { %s2927_s30 = scalar_select %p740_p7, %s2643_s27, 1 }
  0x5e   : > { %s2161_s19 = sshll.u32 %s733_s17, 3  ;;  %s2162_s29 = sshll.u32 %s733_s17, 1 }
  0x5f   : > { %s3293_s15 = sld [smem:[#allocation29_spill]]  ;;  %s2203_s24 = sshll.u32 %s2927_s30, 5 }
  0x60   : > { %s3294_s1 = sld [smem:[#allocation30_spill]]  ;;  %s761_s21 = scalar_lea.vmem %s3227_s7, %s2927_s30 }
  0x61   : > { %s3295_s4 = sld [smem:[#allocation31_spill]]  ;;  %s764_s0 = scalar_lea.vmem %s3228_s8, %s2927_s30 }
  0x62   : > { %s3296_s6 = sld [smem:[#allocation32_spill]]  ;;  %s731_s12 = scalar_lea.vmem [#allocation8], %s2922_s18 }
  0x63   : > { %s3298_s28 = sld [smem:[#allocation33_spill]]  ;;  %p2171_p8 = scmp.ne.s32.totalorder %s2643_s27, 0 }
  0x64   : > { %s3300_s20 = sld [smem:[#allocation36_spill]] }
  0x65   : > { %s735_s9 = scalar_lea.vmem %s3293_s15, %s2161_s19 }
  0x66   : > { %s2935_s10 = scalar_lea.vmem %s3294_s1, %s2162_s29  ;;  %s3299_s1 = sld [smem:[#allocation34_spill]] }
  0x67   : > { %s2953_s26 = scalar_lea.vmem %s3295_s4, %s2203_s24  ;;  %s2206_s29 = sshll.u32 %s2927_s30, 6 }
  0x68   : > { %s2958_s16 = scalar_lea.vmem %s3296_s6, %s2203_s24  ;;  %781 = sbr.rel (%p2171_p8) target bundleno = 111 (0x6f), region = 96 }
  0x69   : > { %3297 = sst [smem:[#allocation28_spill]] %s2958_s16  ;;  %s767_s13 = scalar_lea.vmem %s3298_s28, %s2927_s30 }
  0x6a   : > { %s2981_s16 = scalar_lea.vmem %s3300_s20, %s2206_s29 }
  0x6c   : > { %s2975_s4 = scalar_lea.vmem %s3299_s1, %s2203_s24 }
  0x6d   : > { %v782_v0 = vld [vmem:[%s735_s9] sm:$0xff]  ;;  %vm783_vm0 = vcmask 261120  }
  0x6e   : > { %784 = vst.msk [vmem:[#allocation2] sm:$0xff] %vm783_vm0, %v782_v0 }
  0x6f PF: > { %vm793_vm1 = vcmask 261120   ;;  %v825_v8 = vld [vmem:[%s2953_s26 + $0x18] sm:$0xff]  ;;  %v2663_v9 = vmov 0.0   ;;  %v824_v10 = vld [vmem:[%s2953_s26 + $0x10] sm:$0xff]  ;;  %vm2664_vm2 = vmmov 0   ;;  %v823_v11 = vld [vmem:[%s2953_s26 + $0x8] sm:$0xff]  ;;  %s3301_s28 = scalar_lea.vmem %s3222_s2, %s2927_s30  ;;  %s3302_s9 = scalar_lea.vmem %s3223_s3, %s2927_s30 }
  0x70   : > { %2247 = vmatprep.subr.mxu1 %v2663_v9  ;;  %2255 = vmatprep.mubr.msk.f32.mxu1 %vm2664_vm2, %v2663_v9  ;;  %v822_v12 = vld [vmem:[%s2953_s26] sm:$0xff]  ;;  %s3303_s25 = scalar_lea.vmem %s3225_s5, %s2927_s30  ;;  %s2665_s11 = smov 104   ;;  %vm923_vm3 = vcmask 64512   ;;  %v2669_v40 = vmov -1e+30   ;;  %vm1587_vm5 = vcmask 130048  }
  0x71   : > { %2248 = vmatpush3.msra.mxu1 %v825_v8  ;;  %2268 = vmatprep.subr.mxu0 %v2663_v9  ;;  %v2172_v17 = vld [vmem:[%s3301_s28] ss:$0 sm:$0xff]  ;;  %s2666_s22 = smov 120   ;;  %s2667_s17 = smov 112   ;;  %vm1589_vm6 = vcmask 195584   ;;  %vm1805_vm7 = vcmask 523264  }
  0x72   : > { %2249 = vmatprep.subr.mxu1 %v2663_v9  ;;  %2270 = vmatprep.mubr.msk.f32.mxu0 %vm2664_vm2, %v2663_v9  ;;  %v2173_v19 = vld [vmem:[%s3302_s9] ss:$0 sm:$0xff]  ;;  %s2668_s14 = smov 96   ;;  %s3304_s19 = sld [smem:[#allocation28_spill]] }
  0x73   : > { %2250 = vmatpush3.msra.mxu1 %v824_v10  ;;  %v2174_v22 = vld [vmem:[%s3303_s25] ss:$0 sm:$0xff]  ;;  %s2671_s29 = smov 8   ;;  %s2672_s15 = smov 24  }
  0x74   : > { %2251 = vmatprep.subr.mxu1 %v2663_v9  ;;  %v786_v37 = vld [vmem:[%s2935_s10] sm:$0x3]  ;;  %s2670_s10 = smov 64   ;;  %s2673_s1 = smov 16  }
  0x75   : > { %v2985_v1 = vld [vmem:[#allocation2] sm:$0xff]  ;;  %2252 = vmatpush3.msra.mxu1 %v823_v11  ;;  %v787_v38 = vunpack.c.0.s8 %v786_v37  ;;  %p2196_p1 = scmp.ne.s32.totalorder %s2643_s27, 1 }
  0x76   : > { %v794_v2 = vsel %vm793_vm1, %v2985_v1, 0.0  ;;  %2253 = vmatprep.subr.mxu1 %v2663_v9  ;;  %s3309_s27 = sld [smem:[#allocation38_spill]] (!%p2196_p1) }
  0x77   : > { %795 = vadd.xlane.f32.xlu0 %v794_v2  ;;  %2254 = vmatpush3.msra.mxu1 %v822_v12  ;;  %v788_v39 = vcvt.s32.f32 %v787_v38 }
  0x78   : > { %2258 = vmatprep.subr.mxu1 %v2663_v9  ;;  %v1591_v37 = vld [vmem:[%s3304_s19] sm:$0xff] }
  0x79   : > { %vm789_vm4 = vcmp.ne.f32.partialorder %v788_v39, 0.0 }
  0x7a   : > { %v790_v41 = vsel %vm789_vm4, 0.0, %v2669_v40 }
 0x100   : > { %v796_v3 = vpop.xlane.xlu0 %795 }
 0x101   : > { %v798_v4 = vmul.f32 0.03125, %v796_v3 }
 0x103   : > { %v799_v5 = vsub.f32 %v2985_v1, %v798_v4 }
 0x105   : > { %v800_v6 = vmul.f32 %v799_v5, %v799_v5 }
 0x107   : > { %v801_v7 = vsel %vm793_vm1, %v800_v6, 0.0 }
 0x108   : > { %802 = vadd.xlane.f32.xlu0 %v801_v7 }
 0x191   : > { %v803_v13 = vpop.xlane.xlu0 %802 }
 0x192   : > { %v804_v14 = vmul.f32 0.03125, %v803_v13 }
 0x194   : > { %v805_v15 = vadd.f32 1e-05, %v804_v14 }
 0x196   : > { %2457 = vrsqrt.f32 %v805_v15 }
 0x1a3   : > { %v2458_v16 = vpop.eup %2457 }
 0x1a4   : > { %v807_v18 = vmul.f32 %v2458_v16, %v799_v5 }
 0x1a6   : > { %v814_v20 = vmul.f32 %v2172_v17, %v807_v18 }
 0x1a8   : > { %v821_v21 = vadd.f32 %v2173_v19, %v814_v20 }
 0x1aa   : > { %2256 = vmatmul.mubr.msk.f32.vlgmr.msra.gmra.mxu1 %vm793_vm1, %v821_v21 }
 0x1ab   : > { %2260 = vmatprep.mubr.msk.f32.mxu1 %vm2664_vm2, %v2663_v9 }
 0x26a   : > { %v902_v23 = vpop.f32.mrf.mxu1 }
 0x26b   : > { %v3023_v24 = vadd.f32 %v2174_v22, %v902_v23 }
 0x26c   : > { %v2257_v25 = vpop.f32.mrf.mxu1 }
 0x26d   : > { %919 = vrot.lane.b32.xlu0 %v3023_v24, %s2665_s11  ;;  %915 = vrot.lane.b32.xlu1 %v3023_v24, %s2666_s22  ;;  %v906_v26 = vmul.f32 0.35355338, %v3023_v24 }
 0x271   : > { %917 = vrot.lane.b32.xlu1 %v3023_v24, %s2667_s17  ;;  %912 = vrot.lane.b32.xlu0 %v906_v26, %s2665_s11  ;;  %s3310_s11 = sld [smem:[#allocation39_spill]] (!%p2196_p1) }
 0x275   : > { %921 = vrot.lane.b32.xlu1 %v3023_v24, %s2668_s14 }
 0x279   : > { %908 = vrot.lane.b32.xlu1 %v906_v26, %s2666_s22 }
 0x2df   : > { %v916_v27 = vpop.permute.xlu1 %915  ;;  %v3033_v29 = vpop.permute.xlu0 %919 }
 0x2e0   : > { %998 = vrot.lane.b32.xlu1 %v916_v27, %s2668_s14 }
 0x2e3   : > { %v3030_v28 = vpop.permute.xlu1 %917  ;;  %v913_v35 = vpop.permute.xlu0 %912 }
 0x2e4   : > { %1074 = vrot.lane.b32.xlu1 %v3030_v28, %s2668_s14 }
 0x2e7   : > { %v922_v30 = vpop.permute.xlu1 %921 }
 0x2e8   : > { %2259 = vmatpush3.xpose.msk.msra.mxu1 %vm923_vm3, %v922_v30  ;;  %1150 = vrot.lane.b32.xlu1 %v3033_v29, %s2668_s14 }
 0x2e9   : > { %2263 = vmatprep.subr.mxu1 %v2663_v9 }
 0x2eb   : > { %2261 = vmatmul.mubr.msk.f32.vlgmr.msra.gmra.mxu1 %vm923_vm3, %v906_v26  ;;  %v909_v31 = vpop.permute.xlu1 %908 }
 0x2ec   : > { %910 = vrot.lane.b32.xlu1 %v906_v26, %s2667_s17  ;;  %2265 = vmatprep.mubr.msk.f32.mxu1 %vm2664_vm2, %v2663_v9 }
 0x352   : > { %v999_v32 = vpop.permute.xlu1 %998 }
 0x353   : > { %2264 = vmatpush3.xpose.msk.msra.mxu1 %vm923_vm3, %v999_v32 }
 0x354   : > { %2273 = vmatprep.subr.mxu1 %v2663_v9 }
 0x356   : > { %v1075_v33 = vpop.permute.xlu1 %1074  ;;  %2266 = vmatmul.mubr.msk.f32.vlgmr.msra.gmra.mxu1 %vm923_vm3, %v909_v31 }
 0x357   : > { %2269 = vmatpush3.xpose.msk.msra.mxu0 %vm923_vm3, %v1075_v33  ;;  %2275 = vmatprep.mubr.msk.f32.mxu1 %vm2664_vm2, %v2663_v9 }
 0x358   : > { %2278 = vmatprep.subr.mxu0 %v2663_v9 }
 0x35a   : > { %v1151_v34 = vpop.permute.xlu1 %1150 }
 0x35b   : > { %2274 = vmatpush3.xpose.msk.msra.mxu1 %vm923_vm3, %v1151_v34  ;;  %v1594_v34 = vld [vmem:[%s3304_s19 + $0x18] sm:$0xff] }
 0x35c   : > { %2283 = vmatprep.subr.mxu1 %v2663_v9 }
 0x35e   : > { %v911_v36 = vpop.permute.xlu1 %910  ;;  %2276 = vmatmul.mubr.msk.f32.vlgmr.msra.gmra.mxu1 %vm923_vm3, %v913_v35  ;;  %v1593_v35 = vld [vmem:[%s3304_s19 + $0x10] sm:$0xff] }
 0x35f   : > { %2271 = vmatmul.mubr.msk.f32.vlgmr.msra.gmra.mxu0 %vm923_vm3, %v911_v36  ;;  %2285 = vmatprep.mubr.msk.f32.mxu1 %vm2664_vm2, %v2663_v9  ;;  %v1592_v36 = vld [vmem:[%s3304_s19 + $0x8] sm:$0xff] }
 0x360   : > { %2280 = vmatprep.mubr.msk.f32.mxu0 %vm2664_vm2, %v2663_v9 }
 0x3ab   : > { %v994_v42 = vpop.f32.mrf.mxu1 }
 0x3ac   : > { %v995_v43 = vadd.f32 %v994_v42, %v790_v41 }
 0x3ad   : > { %v2262_v44 = vpop.f32.mrf.mxu1 }
 0x3ae   : > { %v1226_v45 = vsel %vm923_vm3, %v995_v43, -inf }
 0x3af   : > { %1227 = vmax.xlane.f32.xlu1 %v1226_v45 }
 0x416   : > { %v1070_v46 = vpop.f32.mrf.mxu1 }
 0x417   : > { %v1071_v47 = vadd.f32 %v1070_v46, %v790_v41 }
 0x418   : > { %v2267_v48 = vpop.f32.mrf.mxu1 }
 0x419   : > { %v1229_v49 = vsel %vm923_vm3, %v1071_v47, -inf }
 0x41a   : > { %1230 = vmax.xlane.f32.xlu0 %v1229_v49 }
 0x41e   : > { %v1222_v50 = vpop.f32.mrf.mxu1 }
 0x41f   : > { %v1223_v51 = vadd.f32 %v1222_v50, %v790_v41  ;;  %v1146_v52 = vpop.f32.mrf.mxu0  ;;  %v2188_v50 = vld [vmem:[%s761_s21] ss:$0 sm:$0xff] }
 0x420   : > { %v1147_v53 = vadd.f32 %v1146_v52, %v790_v41  ;;  %v2277_v54 = vpop.f32.mrf.mxu1 }
 0x421   : > { %v2272_v55 = vpop.f32.mrf.mxu0  ;;  %v1235_v56 = vsel %vm923_vm3, %v1223_v51, -inf }
 0x422   : > { %1236 = vmax.xlane.f32.xlu1 %v1235_v56  ;;  %v1232_v57 = vsel %vm923_vm3, %v1147_v53, -inf }
 0x423   : > { %1233 = vmax.xlane.f32.xlu0 %v1232_v57 }
 0x433   : > { %1346 = vrot.lane.b32.xlu1 %v916_v27, %s2670_s10 }
 0x438   : > { %v1228_v58 = vpop.xlane.xlu1 %1227 }
 0x439   : > { %1270 = vrot.lane.b32.xlu0 %v3023_v24, %s2670_s10  ;;  %v1238_v59 = vsub.f32 %v995_v43, %v1228_v58 }
 0x43b   : > { %v1242_v60 = vmul.f32 1.442695, %v1238_v59 }
 0x43d   : > { %2459 = vpow2.f32 %v1242_v60 }
 0x44a   : > { %v2460_v61 = vpop.eup %2459 }
 0x44b   : > { %v1250_v62 = vsel %vm923_vm3, %v2460_v61, 0.0 }
 0x458   : > { %1251 = vadd.xlane.f32.xlu0 %v1250_v62  ;;  %v1706_v62 = vld [vmem:[%s2975_s4 + $0x8] sm:$0xff] }
 0x4a3   : > { %v1231_v63 = vpop.xlane.xlu0 %1230 }
 0x4a4   : > { %v1239_v0 = vsub.f32 %v1071_v47, %v1231_v63  ;;  %v1705_v63 = vld [vmem:[%s2975_s4] sm:$0xff] }
 0x4a6   : > { %v1244_v2 = vmul.f32 1.442695, %v1239_v0  ;;  %v1797_v0 = vld [vmem:[%s2981_s16 + $0x38] sm:$0xff] }
 0x4a8   : > { %2461 = vpow2.f32 %v1244_v2  ;;  %v1796_v2 = vld [vmem:[%s2981_s16 + $0x30] sm:$0xff] }
 0x4ab   : > { %v1237_v3 = vpop.xlane.xlu1 %1236 }
 0x4ac   : > { %v1241_v4 = vsub.f32 %v1223_v51, %v1237_v3  ;;  %v1234_v5 = vpop.xlane.xlu0 %1233  ;;  %v1795_v3 = vld [vmem:[%s2981_s16 + $0x28] sm:$0xff] }
 0x4ad   : > { %v1240_v6 = vsub.f32 %v1147_v53, %v1234_v5  ;;  %v1793_v5 = vld [vmem:[%s2981_s16 + $0x18] sm:$0xff] }
 0x4ae   : > { %v1248_v7 = vmul.f32 1.442695, %v1241_v4  ;;  %v1794_v4 = vld [vmem:[%s2981_s16 + $0x20] sm:$0xff] }
 0x4af   : > { %v1246_v8 = vmul.f32 1.442695, %v1240_v6  ;;  %v1347_v10 = vpop.permute.xlu1 %1346 }
 0x4b0   : > { %2463 = vpow2.f32 %v1248_v7  ;;  %v1271_v11 = vpop.permute.xlu0 %1270  ;;  %2284 = vmatpush3.msra.mxu1 %v1347_v10 }
 0x4b1   : > { %2465 = vpow2.f32 %v1246_v8  ;;  %2279 = vmatpush3.msra.mxu0 %v1271_v11  ;;  %2293 = vmatprep.subr.mxu1 %v2663_v9  ;;  %v2190_v11 = vld [vmem:[%s764_s0] ss:$0 sm:$0xff] }
 0x4b2   : > { %2288 = vmatprep.subr.mxu0 %v2663_v9 }
 0x4b5   : > { %v2462_v12 = vpop.eup %2461 }
 0x4b6   : > { %v1253_v13 = vsel %vm923_vm3, %v2462_v12, 0.0 }
 0x4b7   : > { %1254 = vadd.xlane.f32.xlu1 %v1253_v13  ;;  %v2191_v13 = vld [vmem:[%s767_s13] ss:$0 sm:$0xff] }
 0x4bd   : > { %v2464_v14 = vpop.eup %2463 }
 0x4be   : > { %v2466_v15 = vpop.eup %2465  ;;  %v1259_v16 = vsel %vm923_vm3, %v2464_v14, 0.0 }
 0x4bf   : > { %1260 = vadd.xlane.f32.xlu1 %v1259_v16  ;;  %v1256_v17 = vsel %vm923_vm3, %v2466_v15, 0.0  ;;  %v1792_v16 = vld [vmem:[%s2981_s16 + $0x10] sm:$0xff] }
 0x4c0   : > { %1257 = vadd.xlane.f32.xlu0 %v1256_v17  ;;  %v1791_v17 = vld [vmem:[%s2981_s16 + $0x8] sm:$0xff] }
 0x4d0   : > { %1422 = vrot.lane.b32.xlu1 %v3030_v28, %s2670_s10 }
 0x4d6   : > { %1498 = vrot.lane.b32.xlu0 %v3033_v29, %s2670_s10 }
 0x4e1   : > { %v1252_v18 = vpop.xlane.xlu0 %1251 }
 0x4e2   : > { %2467 = vrcp.f32 %v1252_v18  ;;  %v1790_v18 = vld [vmem:[%s2981_s16] sm:$0xff] }
 0x4ef   : > { %v2468_v19 = vpop.eup %2467 }
 0x4f0   : > { %v1266_v20 = vmul.f32 %v2468_v19, %v2460_v61  ;;  %v1708_v61 = vld [vmem:[%s2975_s4 + $0x18] sm:$0xff] }
 0x4f2   : > { %2281 = vmatmul.mubr.msk.f32.vlgmr.msra.gmra.mxu0 %vm923_vm3, %v1266_v20 }
 0x4f3   : > { %2290 = vmatprep.mubr.msk.f32.mxu0 %vm2664_vm2, %v2663_v9 }
 0x540   : > { %v1255_v21 = vpop.xlane.xlu1 %1254 }
 0x541   : > { %2469 = vrcp.f32 %v1255_v21 }
 0x548   : > { %v1261_v22 = vpop.xlane.xlu1 %1260 }
 0x549   : > { %2471 = vrcp.f32 %v1261_v22  ;;  %v1258_v23 = vpop.xlane.xlu0 %1257 }
 0x54a   : > { %2473 = vrcp.f32 %v1258_v23 }
 0x54c   : > { %v1423_v24 = vpop.permute.xlu1 %1422 }
 0x54d   : > { %2289 = vmatpush3.msra.mxu0 %v1423_v24  ;;  %v1499_v27 = vpop.permute.xlu0 %1498 }
 0x54e   : > { %v2470_v25 = vpop.eup %2469  ;;  %2298 = vmatprep.subr.mxu0 %v2663_v9 }
 0x54f   : > { %v1267_v26 = vmul.f32 %v2470_v25, %v2462_v12 }
 0x551   : > { %2286 = vmatmul.mubr.msk.f32.vlgmr.msra.gmra.mxu1 %vm923_vm3, %v1267_v26 }
 0x552   : > { %2294 = vmatpush3.msra.mxu1 %v1499_v27  ;;  %2295 = vmatprep.mubr.msk.f32.mxu1 %vm2664_vm2, %v2663_v9 }
 0x553   : > { %2309 = vmatprep.subr.mxu1 %v2663_v9 }
 0x556   : > { %v2472_v28 = vpop.eup %2471 }
 0x557   : > { %v2474_v29 = vpop.eup %2473  ;;  %v1269_v30 = vmul.f32 %v2472_v28, %v2464_v14 }
 0x558   : > { %v1268_v31 = vmul.f32 %v2474_v29, %v2466_v15 }
 0x559   : > { %2296 = vmatmul.mubr.msk.f32.vlgmr.msra.gmra.mxu1 %vm923_vm3, %v1269_v30 }
 0x55a   : > { %2291 = vmatmul.mubr.msk.f32.vlgmr.msra.gmra.mxu0 %vm923_vm3, %v1268_v31  ;;  %2317 = vmatprep.mubr.msk.f32.mxu1 %vm2664_vm2, %v2663_v9 }
 0x55b   : > { %2306 = vmatprep.mubr.msk.f32.mxu0 %vm2664_vm2, %v2663_v9  ;;  %2299 = vmatpush3.msra.mxu0 %v1594_v34 }
 0x55c   : > { %2300 = vmatprep.subr.mxu0 %v2663_v9  ;;  %2310 = vmatpush3.msra.mxu1 %v1708_v61 }
 0x55d   : > { %2301 = vmatpush3.msra.mxu0 %v1593_v35  ;;  %2311 = vmatprep.subr.mxu1 %v2663_v9 }
 0x55e   : > { %2302 = vmatprep.subr.mxu0 %v2663_v9 }
 0x55f   : > { %2303 = vmatpush3.msra.mxu0 %v1592_v36 }
 0x560   : > { %2304 = vmatprep.subr.mxu0 %v2663_v9 }
 0x561   : > { %2305 = vmatpush3.msra.mxu0 %v1591_v37 }
 0x562   : > { %2320 = vmatprep.subr.mxu0 %v2663_v9 }
 0x5b2   : > { %v1342_v32 = vpop.f32.mrf.mxu0 }
 0x5b4   : > { %v2282_v33 = vpop.f32.mrf.mxu0 }
 0x611   : > { %v1418_v38 = vpop.f32.mrf.mxu1 }
 0x612   : > { %1575 = vrot.lane.b32.xlu1 %v1418_v38, %s2671_s29 }
 0x613   : > { %v2287_v39 = vpop.f32.mrf.mxu1 }
 0x619   : > { %v1570_v40 = vpop.f32.mrf.mxu1 }
 0x61a   : > { %v1494_v41 = vpop.f32.mrf.mxu0  ;;  %1583 = vrot.lane.b32.xlu1 %v1570_v40, %s2672_s15 }
 0x61b   : > { %1579 = vrot.lane.b32.xlu0 %v1494_v41, %s2673_s1  ;;  %v2297_v42 = vpop.f32.mrf.mxu1 }
 0x61c   : > { %v2292_v43 = vpop.f32.mrf.mxu0 }
 0x684   : > { %v1576_v44 = vpop.permute.xlu1 %1575 }
 0x685   : > { %v1586_v45 = vsel %vm923_vm3, %v1342_v32, %v1576_v44 }
 0x68c   : > { %v1584_v47 = vpop.permute.xlu1 %1583 }
 0x68d   : > { %v1580_v46 = vpop.permute.xlu0 %1579 }
 0x68e   : > { %v1588_v48 = vsel %vm1587_vm5, %v1586_v45, %v1580_v46 }
 0x68f   : > { %v1590_v49 = vsel %vm1589_vm6, %v1588_v48, %v1584_v47 }
 0x690   : > { %2307 = vmatmul.mubr.msk.f32.vlgmr.msra.gmra.mxu0 %vm793_vm1, %v1590_v49 }
 0x691   : > { %2336 = vmatprep.mubr.msk.f32.mxu0 %vm2664_vm2, %v2663_v9  ;;  %2321 = vmatpush3.msra.mxu0 %v1797_v0 }
 0x692   : > { %2322 = vmatprep.subr.mxu0 %v2663_v9 }
 0x693   : > { %2323 = vmatpush3.msra.mxu0 %v1796_v2 }
 0x694   : > { %2324 = vmatprep.subr.mxu0 %v2663_v9 }
 0x695   : > { %2325 = vmatpush3.msra.mxu0 %v1795_v3 }
 0x696   : > { %2326 = vmatprep.subr.mxu0 %v2663_v9 }
 0x697   : > { %2327 = vmatpush3.msra.mxu0 %v1794_v4 }
 0x698   : > { %2328 = vmatprep.subr.mxu0 %v2663_v9 }
 0x699   : > { %2329 = vmatpush3.msra.mxu0 %v1793_v5 }
 0x69a   : > { %2330 = vmatprep.subr.mxu0 %v2663_v9 }
 0x69b   : > { %2331 = vmatpush3.msra.mxu0 %v1792_v16 }
 0x69c   : > { %2332 = vmatprep.subr.mxu0 %v2663_v9 }
 0x69d   : > { %2333 = vmatpush3.msra.mxu0 %v1791_v17 }
 0x69e   : > { %2334 = vmatprep.subr.mxu0 %v2663_v9 }
 0x69f   : > { %2335 = vmatpush3.msra.mxu0 %v1790_v18 }
 0x750   : > { %v1671_v51 = vpop.f32.mrf.mxu0 }
 0x751   : > { %v1672_v52 = vadd.f32 %v2188_v50, %v1671_v51 }
 0x752   : > { %v2308_v53 = vpop.f32.mrf.mxu0 }
 0x753   : > { %v3106_v54 = vadd.f32 %v1672_v52, %v2985_v1  ;;  %v1707_v1 = vld [vmem:[%s2975_s4 + $0x10] sm:$0xff]  ;;  %s3305_s4 = sld [smem:[#allocation27_spill]] }
 0x754   : > { %2312 = vmatpush3.msra.mxu1 %v1707_v1 }
 0x755   : > { %v1678_v55 = vsel %vm793_vm1, %v3106_v54, 0.0  ;;  %2313 = vmatprep.subr.mxu1 %v2663_v9 }
 0x756   : > { %1679 = vadd.xlane.f32.xlu0 %v1678_v55  ;;  %2314 = vmatpush3.msra.mxu1 %v1706_v62 }
 0x757   : > { %2315 = vmatprep.subr.mxu1 %v2663_v9 }
 0x758   : > { %2316 = vmatpush3.msra.mxu1 %v1705_v63 }
 0x759   : > { %s3307_s0 = scalar_lea.vmem [#allocation3], %s3305_s4  ;;  %s3308_s13 = scalar_lea.vmem [#allocation6], %s3305_s4 }
 0x75a   : > { %v2192_v19 = vld [vmem:[%s3307_s0] ss:$0 sm:$0xff] }
 0x75b   : > { %v2194_v24 = vld [vmem:[%s3308_s13] ss:$0 sm:$0xff] }
 0x7df   : > { %v1680_v56 = vpop.xlane.xlu0 %1679 }
 0x7e0   : > { %v1681_v57 = vmul.f32 0.03125, %v1680_v56 }
 0x7e2   : > { %v1682_v58 = vsub.f32 %v3106_v54, %v1681_v57 }
 0x7e4   : > { %v1683_v59 = vmul.f32 %v1682_v58, %v1682_v58 }
 0x7e6   : > { %v1684_v60 = vsel %vm793_vm1, %v1683_v59, 0.0 }
 0x7e7   : > { %1685 = vadd.xlane.f32.xlu1 %v1684_v60 }
 0x870   : > { %v1686_v6 = vpop.xlane.xlu1 %1685 }
 0x871   : > { %v1687_v7 = vmul.f32 0.03125, %v1686_v6 }
 0x873   : > { %v1688_v8 = vadd.f32 1e-05, %v1687_v7 }
 0x875   : > { %2475 = vrsqrt.f32 %v1688_v8 }
 0x882   : > { %v2476_v10 = vpop.eup %2475 }
 0x883   : > { %v1690_v12 = vmul.f32 %v2476_v10, %v1682_v58 }
 0x885   : > { %v1697_v14 = vmul.f32 %v2190_v11, %v1690_v12 }
 0x887   : > { %v1704_v15 = vadd.f32 %v2191_v13, %v1697_v14 }
 0x889   : > { %2318 = vmatmul.mubr.msk.f32.vlgmr.msra.gmra.mxu1 %vm793_vm1, %v1704_v15 }
 0x949   : > { %v1785_v20 = vpop.f32.mrf.mxu1 }
 0x94a   : > { %v1786_v21 = vadd.f32 %v2192_v19, %v1785_v20 }
 0x94b   : > { %v2319_v22 = vpop.f32.mrf.mxu1 }
 0x94c   : > { %v1789_v23 = vmax.f32 %v1786_v21, 0.0 }
 0x94e   : > { %2337 = vmatmul.mubr.msk.f32.vlgmr.msra.gmra.mxu0 %vm1805_vm7, %v1789_v23 }
 0xa0e   : > { %v1875_v25 = vpop.f32.mrf.mxu0 }
 0xa0f   : > { %v1876_v26 = vadd.f32 %v2194_v24, %v1875_v25  ;;  %1884 = sbr.rel (%p2196_p1) target bundleno = 2889 (0xb49), region = 100 }
 0xa10   : > { %v2338_v27 = vpop.f32.mrf.mxu0 }
 0xa11   : > { %v1879_v28 = vadd.f32 %v1876_v26, %v3106_v54 }
 0xa13   : > { %1880 = vst.msk [vmem:[#allocation2] sm:$0xff] %vm793_vm1, %v1879_v28 }
 0xa14   : > { %v1887_v9 = vsel %vm793_vm1, %v1879_v28, 0.0  ;;  %v2197_v38 = vld [vmem:[%s3309_s27] ss:$0 sm:$0xff] }
 0xa15   : > { %1888 = vadd.xlane.f32.xlu0 %v1887_v9  ;;  %v2198_v40 = vld [vmem:[%s3310_s11] ss:$0 sm:$0xff] }
 0xa9e   : > { %v1889_v29 = vpop.xlane.xlu0 %1888 }
 0xa9f   : > { %v1890_v30 = vmul.f32 0.03125, %v1889_v29 }
 0xaa1   : > { %v1891_v31 = vsub.f32 %v1879_v28, %v1890_v30 }
 0xaa3   : > { %v1892_v32 = vmul.f32 %v1891_v31, %v1891_v31 }
 0xaa5   : > { %v1893_v33 = vsel %vm793_vm1, %v1892_v32, 0.0 }
 0xaa6   : > { %1894 = vadd.xlane.f32.xlu0 %v1893_v33 }
 0xb2f   : > { %v1895_v34 = vpop.xlane.xlu0 %1894 }
 0xb30   : > { %v1896_v35 = vmul.f32 0.03125, %v1895_v34 }
 0xb32   : > { %v1897_v36 = vadd.f32 1e-05, %v1896_v35 }
 0xb34   : > { %2477 = vrsqrt.f32 %v1897_v36 }
 0xb41   : > { %v2478_v37 = vpop.eup %2477 }
 0xb42   : > { %v1899_v39 = vmul.f32 %v2478_v37, %v1891_v31 }
 0xb44   : > { %v1906_v41 = vmul.f32 %v2197_v38, %v1899_v39 }
 0xb46   : > { %v1913_v42 = vadd.f32 %v2198_v40, %v1906_v41 }
 0xb48   : > { %1914 = vst.msk [vmem:[%s731_s12] sm:$0xff] %vm793_vm1, %v1913_v42 }
 0xb49 PF: > { %s3311_s22 = sld [smem:[#allocation17_spill]]  ;;  %s1929_s6 = sshll.u32 %s731_s12, 4  ;;  %s1930_s6 = int_to_ptr.vmem [resolvable:$true] %s1929_s6 }
 0xb4a   : > { %s3312_s17 = sld [smem:[#allocation13_spill]]  ;;  %s2535_s21 = scalar_lea.vmem %s1930_s6, 128 }
 0xb4b   : > { %s3314_s15 = sld [smem:[#allocation40_spill]]  ;;  %p2536_p9 = scmp.ne.s32.totalorder %s1930_s6, %s2535_s21 }
 0xb4c   : > { %s2674_s24 = smov [#allocation8]  }
 0xb4d   : > { %p2537_p10 = pnand %p2536_p9, %p2848_p12  ;;  %s2539_s20 = sshll.u32 %s2674_s24, 4  ;;  %s2540_s20 = int_to_ptr.vmem [resolvable:$false] %s2539_s20 }
 0xb4e   : > { %s2541_s9 = scalar_lea.vmem %s2540_s20, 256  ;;  %p2542_p3 = scmp.lt.s32.totalorder %s1930_s6, %s2540_s20 }
 0xb4f   : > { %s2200_s10 = sshll.u32 %s3311_s22, 7  ;;  %p2538_p11 = pneg %p2537_p10 }
 0xb50   : > { %s3315_s28 = sand.u32 1, %s3312_s17   ;;  %p2543_p5 = scmp.lt.s32.totalorder %s2541_s9, %s2535_s21 }
 0xb51   : > { %s1927_s1 = scalar_lea.hbm %s3314_s15, %s2200_s10  ;;  %s1916_s4 = scalar_lea.sflag [#allocation5], %s3315_s28 }
 0xb52   : > { %p2544_p6 = por %p2543_p5, %p2542_p3 }
 0xb54   : > { %p2545_p13 = pnand %p2544_p6, %p2538_p11 }
 0xb56   : > { %2548 = shalt.err (!%p2545_p13)
}
 0xb57   : > { %s2549_s26 = scalar_lea.hbm %s1927_s1, 128  ;;  %s2553_s0 = scalar_lea.hbm %s3314_s15, 256 }
 0xb58   : > { %p2550_p0 = scmp.ne.s32.totalorder %s1927_s1, %s2549_s26  ;;  %p2554_p8 = scmp.lt.s32.totalorder %s1927_s1, %s3314_s15 }
 0xb59   : > { %p2555_p1 = scmp.lt.s32.totalorder %s2553_s0, %s2549_s26 }
 0xb5a   : > { %p2551_p4 = pnand %p2550_p0, %p2848_p12 }
 0xb5b   : > { %p2556_p9 = por %p2555_p1, %p2554_p8 }
 0xb5c   : > { %p2552_p7 = pneg %p2551_p4 }
 0xb5e   : > { %p2557_p10 = pnand %p2556_p9, %p2552_p7 }
 0xb60   : > { %2560 = shalt.err (!%p2557_p10)
}
 0xb61   : > { %2343 = dma.vmem_to_hbm [thread:$0]  (%p2848_p12), %s1930_s6, 128, %s1927_s1, %s1916_s4  }
 0xb62 PF: > { %s3316_s16 = sld [smem:[#allocation20_spill]] }
 0xb63   : > { %s3317_s27 = sld [smem:[#allocation12_spill]] }
 0xb68   : > { %p2357_p11 = scmp.ge.s32.totalorder %s3316_s16, 2 }
 0xb69   : > { %s1941_s25 = sand.u32 1, %s3317_s27  }
 0xb6a   : > { %p2353_p3 = pnand %p2357_p11, %p2858_p2  ;;  %s1942_s11 = scalar_lea.sflag [#allocation5], %s1941_s25 }
 0xb6c   : > { %p2354_p5 = pneg %p2353_p3 }
 0xb6e   : > { %2614 = dma.done.wait (%p2354_p5), %s1942_s11, 128  }
 0xb6f   : > { %2616 = vsyncadd (%p2354_p5), %s1942_s11, 4294967168  ;;  %s35_s0 = sadd.s32 1, %s3316_s16   ;;  %s3319_s21 = sld [smem:[#allocation13_spill]] }
 0xb70   : > { %p32_p6 = scmp.ge.s32.totalorder %s35_s0, 6   ;;  %s3320_s22 = sld [smem:[#allocation14_spill]] }
 0xb71   : > { %s3321_s23 = sld [smem:[#allocation24_spill]] }
 0xb72   : > { %s3322_s24 = sld [smem:[#allocation15_spill]] }
 0xb73   : > { %s3323_s25 = sld [smem:[#allocation16_spill]] }
 0xb74   : > { %s3324_s26 = sld [smem:[#allocation23_spill]]  ;;  %34 = sbr.rel (!%p32_p6) target bundleno = 24 (0x18), region = 186 }
 0xb75   : > { %s3325_s27 = sld [smem:[#allocation18_spill]] }
 0xb76   : > { %s3326_s28 = sld [smem:[#allocation19_spill]] }
 0xb77   : > { %s3327_s29 = sld [smem:[#allocation21_spill]] }
 0xb78   : > { %s3328_s30 = sld [smem:[#allocation22_spill]] }
 0xb79   :  { %1947 = vsyncpa [#allocation4], 1 }
 0xb7a   :  { %1949 = vsyncpa [#allocation4 + $0x1], 1 }
 0xb7b   :  { %1950 = vsyncpa [#allocation7], 1 }
 0xb7c   :  { %1952 = vsyncpa [#allocation7 + $0x1], 1 }
 0xb7d   :  { %1953 = vsyncpa [#allocation5], 1 }
 0xb7e   :  { %1955 = vsyncpa [#allocation5 + $0x1], 1 }

</bundles_post_ra>
